<compile_context>
chip_gen: v7x
topology: tpu7x:2x2x1
jax: 0.10.0
libtpu: 0.0.40
codegen_flags: <defaults>
</compile_context>

<pallas_src>
import jax
import jax.numpy as jnp
from jax.experimental import pallas as pl
from jax.experimental.pallas import tpu as pltpu


def _round_up(x, m):
    return ((x + m - 1) // m) * m


def ffn_kernel(x_ref, w1_ref, b1_ref, w2_ref, b2_ref, o_ref, acc_ref):
    # x_ref:  (tm, C)   bf16   current M-tile of the flattened (B*T, C) input
    # w1_ref: (C, th)   bf16   pre-transposed W1 slab (in, out) -> standard K@N
    # b1_ref: (1, th)   f32
    # w2_ref: (th, C)   bf16   pre-transposed W2 slab
    # b2_ref: (1, C)    f32
    # o_ref:  (tm, C)   f32
    # acc_ref:(tm, C)   f32    accumulator, resident across the Hd grid axis
    hd = pl.program_id(1)

    @pl.when(hd == 0)
    def _():
        # Start the accumulator at b2 so the bias is added exactly once.
        acc_ref[...] = jnp.broadcast_to(b2_ref[...], acc_ref.shape)

    # h_chunk = x @ W1[:, hd-slab]  (bf16 MXU, f32 accumulate), bias + ReLU in f32.
    h = jnp.dot(x_ref[...], w1_ref[...], preferred_element_type=jnp.float32)
    h = jnp.maximum(h + b1_ref[...], jnp.float32(0.0))

    # y += h_chunk @ W2[hd-slab, :]  (cast hidden to bf16 right before the MXU).
    acc_ref[...] += jnp.dot(h.astype(jnp.bfloat16), w2_ref[...],
                            preferred_element_type=jnp.float32)

    # TODO(synk): training-mode dropout would go here; eval mode => identity.
    @pl.when(hd == pl.num_programs(1) - 1)
    def _():
        o_ref[...] = acc_ref[...].astype(o_ref.dtype)


def feed_forward(x, w1, b1, w2, b2, *, tm_target=256, th_target=2048):
    """x: (B, T, C) f32; w1: (4C, C); b1: (4C,); w2: (C, 4C); b2: (C,).

    Weights arrive in PyTorch nn.Linear (out_features, in_features) layout and are
    transposed + cast to bf16 once here (amortized over all M-tiles).
    """
    B, T, C = x.shape
    Hd = w1.shape[0]
    assert w1.shape == (Hd, C) and w2.shape == (C, Hd)
    assert b1.shape == (Hd,) and b2.shape == (C,)
    assert C % 128 == 0, "n_embed must be a multiple of 128 for lane-dense tiles"

    M = B * T

    # --- M tiling: large M -> 256-row tiles (multiple of 128 for v5e, 256 for
    # v6e/v7x); small M -> pad to a single 8-row-aligned tile. ---
    if M <= tm_target:
        tm = _round_up(M, 8)
    else:
        tm = tm_target
    M_pad = _round_up(M, tm)
    n_m = M_pad // tm

    # --- Hd tiling: largest slab <= th_target that divides Hd, preferring
    # multiples of 256 (v6e/v7x MXU is 256 wide). ---
    th = Hd
    for cand in (2048, 1792, 1536, 1280, 1024, 768, 512, 384, 256, 128):
        if cand <= min(Hd, th_target) and Hd % cand == 0:
            th = cand
            break
    n_h = Hd // th

    # --- Wrapper-side prep (one-time): flatten, pad, cast to bf16, transpose. ---
    x2 = x.reshape(M, C).astype(jnp.bfloat16)
    if M_pad != M:
        x2 = jnp.pad(x2, ((0, M_pad - M), (0, 0)))
    w1t = w1.T.astype(jnp.bfloat16)          # (C, Hd)
    w2t = w2.T.astype(jnp.bfloat16)          # (Hd, C)
    b1_2 = b1.reshape(1, Hd).astype(jnp.float32)
    b2_2 = b2.reshape(1, C).astype(jnp.float32)

    out_bytes = jnp.dtype(x.dtype).itemsize

    # --- VMEM budget: double-buffered tiles + weight slabs + scratch + the live
    # (tm, th) hidden intermediate; headroom for compiler-internal scratch.
    # Stays far below v7x's 64 MiB physical VMEM for these tile sizes. ---
    needed = (
        2 * tm * C * 2          # x tile, bf16, double-buffered
        + 2 * C * th * 2        # w1 slab, bf16, double-buffered
        + 2 * th * 4            # b1 slab
        + 2 * th * C * 2        # w2 slab, bf16, double-buffered
        + 2 * C * 4             # b2
        + 2 * tm * C * out_bytes  # output tile, double-buffered
        + tm * C * 4            # f32 accumulator scratch
        + tm * th * (4 + 2)     # live hidden chunk (f32 + bf16 cast)
    )
    vmem_limit = min(max(needed + (8 << 20), 16 << 20), 64 << 20)
    assert needed < vmem_limit, "chosen tiles exceed VMEM budget"

    y2 = pl.pallas_call(
        ffn_kernel,
        out_shape=jax.ShapeDtypeStruct((M_pad, C), x.dtype),
        grid_spec=pltpu.PrefetchScalarGridSpec(
            num_scalar_prefetch=0,
            grid=(n_m, n_h),
            in_specs=[
                # x tile: constant over the Hd axis -> stays resident per M-tile.
                pl.BlockSpec((tm, C), lambda i, h: (i, 0)),
                # Weight / bias slabs stream along the Hd axis.
                pl.BlockSpec((C, th), lambda i, h: (0, h)),
                pl.BlockSpec((1, th), lambda i, h: (0, h)),
                pl.BlockSpec((th, C), lambda i, h: (h, 0)),
                pl.BlockSpec((1, C), lambda i, h: (0, 0)),
            ],
            out_specs=pl.BlockSpec((tm, C), lambda i, h: (i, 0)),
            scratch_shapes=[pltpu.VMEM((tm, C), jnp.float32)],
        ),
        compiler_params=pltpu.CompilerParams(
            dimension_semantics=("parallel", "arbitrary"),
            vmem_limit_bytes=vmem_limit,
        ),
    )(x2, w1t, b1_2, w2t, b2_2)

    return y2[:M].reshape(B, T, C)


def reference(x, w1, b1, w2, b2):
    """Pure-JAX f32 reference mirroring the PyTorch forward (eval mode)."""
    h = jnp.maximum(x @ w1.T + b1, 0.0)
    return h @ w2.T + b2


if __name__ == "__main__":
    # Small shapes consistent with the module: n_embed = 384 (the module's value,
    # a multiple of 128 -> lane-dense), hidden = 4 * n_embed = 1536.
    B, T = 2, 16
    n_embed = 384
    hidden = 4 * n_embed

    key = jax.random.PRNGKey(0)
    kx, kw1, kb1, kw2, kb2 = jax.random.split(key, 5)

    x = jax.random.normal(kx, (B, T, n_embed), dtype=jnp.float32)

    # PyTorch nn.Linear-like init: U(-1/sqrt(fan_in), 1/sqrt(fan_in)), (out, in) layout.
    s1 = 1.0 / (n_embed ** 0.5)
    s2 = 1.0 / (hidden ** 0.5)
    w1 = jax.random.uniform(kw1, (hidden, n_embed), jnp.float32, -s1, s1)
    b1 = jax.random.uniform(kb1, (hidden,), jnp.float32, -s1, s1)
    w2 = jax.random.uniform(kw2, (n_embed, hidden), jnp.float32, -s2, s2)
    b2 = jax.random.uniform(kb2, (n_embed,), jnp.float32, -s2, s2)

    y = feed_forward(x, w1, b1, w2, b2)
    y = jax.block_until_ready(y)

    y_ref = reference(x, w1, b1, w2, b2)
    assert y.shape == (B, T, n_embed)
    # bf16 MXU inputs with f32 accumulation: loosen tolerance accordingly.
    assert jnp.allclose(y, y_ref, atol=5e-2, rtol=5e-2), "mismatch vs reference"

    print("KERNEL_OK")
</pallas_src>

<mosaic_0001>
module attributes {stable_mosaic.version = 11 : i64} {
  func.func @ffn_kernel(%arg0: i32, %arg1: i32, %arg2: memref<32x384xbf16, #tpu.memory_space<vmem>>, %arg3: memref<384x1536xbf16, #tpu.memory_space<vmem>>, %arg4: memref<1x1536xf32, #tpu.memory_space<vmem>>, %arg5: memref<1536x384xbf16, #tpu.memory_space<vmem>>, %arg6: memref<1x384xf32, #tpu.memory_space<vmem>>, %arg7: memref<32x384xf32, #tpu.memory_space<vmem>>, %arg8: memref<32x384xf32, #tpu.memory_space<vmem>>) attributes {dimension_semantics = [#tpu.dimension_semantics<parallel>, #tpu.dimension_semantics<arbitrary>], iteration_bounds = array<i64: 1, 1>, scalar_prefetch = 0 : i64, scratch_operands = 1 : i64, tpu.core_type = #tpu.core_type<tc>, window_params = [{transform_indices = @transform_0, window_bounds = array<i64: 32, 384>}, {transform_indices = @transform_1, window_bounds = array<i64: 384, 1536>}, {transform_indices = @transform_2, window_bounds = array<i64: 1, 1536>}, {transform_indices = @transform_3, window_bounds = array<i64: 1536, 384>}, {pipeline_mode = #tpu.pipeline_mode<synchronous>, transform_indices = @transform_4, window_bounds = array<i64: 1, 384>}, {transform_indices = @transform_5, window_bounds = array<i64: 32, 384>}]} {
    %c0_i32 = arith.constant 0 : i32
    %0 = arith.cmpi eq, %arg1, %c0_i32 : i32
    %1 = arith.extui %0 : i1 to i32
    %c0_i32_0 = arith.constant 0 : i32
    %2 = arith.cmpi ne, %1, %c0_i32_0 : i32
    scf.if %2 {
      %c0_16 = arith.constant 0 : index
      %c0_17 = arith.constant 0 : index
      %20 = vector.load %arg6[%c0_16, %c0_17] : memref<1x384xf32, #tpu.memory_space<vmem>>, vector<1x384xf32>
      %21 = vector.shape_cast %20 : vector<1x384xf32> to vector<1x384xf32>
      %22 = vector.broadcast %21 : vector<1x384xf32> to vector<32x384xf32>
      %c0_18 = arith.constant 0 : index
      %c0_19 = arith.constant 0 : index
      %23 = vector.load %arg8[%c0_18, %c0_19] : memref<32x384xf32, #tpu.memory_space<vmem>>, vector<32x384xf32>
      tpu.vector_store %arg8[%c0_18, %c0_19], %22 {strides = array<i32>} : memref<32x384xf32, #tpu.memory_space<vmem>>, vector<32x384xf32>,
    } else {
    }
    %c0 = arith.constant 0 : index
    %c0_1 = arith.constant 0 : index
    %3 = vector.load %arg2[%c0, %c0_1] : memref<32x384xbf16, #tpu.memory_space<vmem>>, vector<32x384xbf16>
    %c0_2 = arith.constant 0 : index
    %c0_3 = arith.constant 0 : index
    %4 = vector.load %arg3[%c0_2, %c0_3] : memref<384x1536xbf16, #tpu.memory_space<vmem>>, vector<384x1536xbf16>
    %cst = arith.constant dense<0.000000e+00> : vector<32x1536xf32>
    %5 = tpu.matmul %3, %4, %cst {dimension_numbers = #tpu.dot_dimension_numbers<[1], [0], [0], [1], [0, 0, 1, 1], [], []>} : vector<32x384xbf16>, vector<384x1536xbf16>, vector<32x1536xf32> -> vector<32x1536xf32>
    %c0_4 = arith.constant 0 : index
    %c0_5 = arith.constant 0 : index
    %6 = vector.load %arg4[%c0_4, %c0_5] : memref<1x1536xf32, #tpu.memory_space<vmem>>, vector<1x1536xf32>
    %7 = vector.broadcast %6 : vector<1x1536xf32> to vector<32x1536xf32>
    %8 = arith.addf %5, %7 : vector<32x1536xf32>
    %cst_6 = arith.constant 0.000000e+00 : f32
    %9 = vector.broadcast %cst_6 : f32 to vector<32x1536xf32>
    %10 = arith.maximumf %8, %9 : vector<32x1536xf32>
    %c0_7 = arith.constant 0 : index
    %c0_8 = arith.constant 0 : index
    %11 = vector.load %arg8[%c0_7, %c0_8] : memref<32x384xf32, #tpu.memory_space<vmem>>, vector<32x384xf32>
    %12 = arith.truncf %10 : vector<32x1536xf32> to vector<32x1536xbf16>
    %c0_9 = arith.constant 0 : index
    %c0_10 = arith.constant 0 : index
    %13 = vector.load %arg5[%c0_9, %c0_10] : memref<1536x384xbf16, #tpu.memory_space<vmem>>, vector<1536x384xbf16>
    %cst_11 = arith.constant dense<0.000000e+00> : vector<32x384xf32>
    %14 = tpu.matmul %12, %13, %cst_11 {dimension_numbers = #tpu.dot_dimension_numbers<[1], [0], [0], [1], [0, 0, 1, 1], [], []>} : vector<32x1536xbf16>, vector<1536x384xbf16>, vector<32x384xf32> -> vector<32x384xf32>
    %15 = arith.addf %11, %14 : vector<32x384xf32>
    %c0_12 = arith.constant 0 : index
    %c0_13 = arith.constant 0 : index
    %16 = vector.load %arg8[%c0_12, %c0_13] : memref<32x384xf32, #tpu.memory_space<vmem>>, vector<32x384xf32>
    tpu.vector_store %arg8[%c0_12, %c0_13], %15 {strides = array<i32>} : memref<32x384xf32, #tpu.memory_space<vmem>>, vector<32x384xf32>,
    %c0_i32_14 = arith.constant 0 : i32
    %17 = arith.cmpi eq, %arg1, %c0_i32_14 : i32
    %18 = arith.extui %17 : i1 to i32
    %c0_i32_15 = arith.constant 0 : i32
    %19 = arith.cmpi ne, %18, %c0_i32_15 : i32
    scf.if %19 {
      %c0_16 = arith.constant 0 : index
      %c0_17 = arith.constant 0 : index
      %20 = vector.load %arg8[%c0_16, %c0_17] : memref<32x384xf32, #tpu.memory_space<vmem>>, vector<32x384xf32>
      %c0_18 = arith.constant 0 : index
      %c0_19 = arith.constant 0 : index
      %21 = vector.load %arg7[%c0_18, %c0_19] : memref<32x384xf32, #tpu.memory_space<vmem>>, vector<32x384xf32>
      tpu.vector_store %arg7[%c0_18, %c0_19], %20 {strides = array<i32>} : memref<32x384xf32, #tpu.memory_space<vmem>>, vector<32x384xf32>,
    } else {
    }
    return
  }
  func.func @transform_0(%arg0: i32, %arg1: i32) -> (i32, i32) {
    %c0_i32 = arith.constant 0 : i32
    %c0_i32_0 = arith.constant 0 : i32
    return %arg0, %c0_i32 : i32, i32
  }
  func.func @transform_1(%arg0: i32, %arg1: i32) -> (i32, i32) {
    %c0_i32 = arith.constant 0 : i32
    %c0_i32_0 = arith.constant 0 : i32
    return %c0_i32, %arg1 : i32, i32
  }
  func.func @transform_2(%arg0: i32, %arg1: i32) -> (i32, i32) {
    %c0_i32 = arith.constant 0 : i32
    %c0_i32_0 = arith.constant 0 : i32
    return %c0_i32, %arg1 : i32, i32
  }
  func.func @transform_3(%arg0: i32, %arg1: i32) -> (i32, i32) {
    %c0_i32 = arith.constant 0 : i32
    %c0_i32_0 = arith.constant 0 : i32
    return %arg1, %c0_i32 : i32, i32
  }
  func.func @transform_4(%arg0: i32, %arg1: i32) -> (i32, i32) {
    %c0_i32 = arith.constant 0 : i32
    %c0_i32_0 = arith.constant 0 : i32
    %c0_i32_1 = arith.constant 0 : i32
    return %c0_i32, %c0_i32_0 : i32, i32
  }
  func.func @transform_5(%arg0: i32, %arg1: i32) -> (i32, i32) {
    %c0_i32 = arith.constant 0 : i32
    %c0_i32_0 = arith.constant 0 : i32
    return %arg0, %c0_i32 : i32, i32
  }
}

</mosaic_0001>

<bundles_post_ra>
// kernel: tpu_custom_call.1
= control target key start
LH: loop header
LB: loop body
LE: loop exit
PB: predicated region body
PF: predicated region fallthrough
CT: control target
= control target key end

     0   :  { %10 = vsyncpa [#allocation4], 0  ;;  %s7453_s0 = inlined_call_operand.hbm [shape: bf16[32,384], index: 0, kind: input, shape index: {}]   ;;  %s7454_s1 = inlined_call_operand.hbm [shape: bf16[384,1536], index: 1, kind: input, shape index: {}]   ;;  %s7455_s2 = inlined_call_operand.hbm [shape: f32[1,1536], index: 2, kind: input, shape index: {}]   ;;  %s7456_s3 = inlined_call_operand.hbm [shape: bf16[1536,384], index: 3, kind: input, shape index: {}]   ;;  %s7457_s4 = inlined_call_operand.hbm [shape: f32[1,384], index: 4, kind: input, shape index: {}]   ;;  %s7458_s5 = inlined_call_operand.hbm [shape: f32[32,384], index: 5, kind: output, shape index: {}]  }
   0x1   :  { %11 = vsyncpa [#allocation7], 0 }
   0x2   :  { %12 = vsyncpa [#allocation10], 0 }
   0x3   :  { %13 = vsyncpa [#allocation5], 0  ;;  %s7143_s18 = smov [#allocation6]   ;;  %s7003_s22 = scalar_lea.hbm %s7454_s1, 36864 }
   0x4   :  { %s31_s19 = sshll.u32 %s7143_s18, 4  ;;  %p7004_p0 = scmp.ne.s32.totalorder %s7454_s1, %s7003_s22  ;;  %s32_s19 = int_to_ptr.vmem [resolvable:$true] %s31_s19 }
   0x5   :  { %p7007_p1 = scmp.lt.u32.totalorder %s7003_s22, %s7454_s1 }
   0x7   :  { %p7009_p2 = pnand %p7007_p1, %p7004_p0 }
   0x9   :  { %7012 = shalt.err (!%p7009_p2)
}
   0xa   :  { %s7013_s27 = scalar_lea.vmem %s32_s19, 36864  ;;  %p7018_p4 = scmp.lt.s32.totalorder %s32_s19, %s32_s19 }
   0xb   :  { %p7014_p3 = scmp.ne.s32.totalorder %s32_s19, %s7013_s27  ;;  %p7019_p5 = scmp.lt.s32.totalorder %s7013_s27, %s7013_s27 }
   0xd   :  { %p7020_p6 = por %p7019_p5, %p7018_p4 }
   0xf   :  { %p7021_p7 = pnand %p7020_p6, %p7014_p3 }
  0x11   :  { %7024 = shalt.err (!%p7021_p7)
}
  0x12   :  { %s7144_s28 = smov 768   ;;  %s7145_s29 = smov 48  }
  0x13   :  { %37 = dma.hbm_to_vmem [thread:$0]  %s7454_s1, 36864, %s32_s19, [#allocation7], %s7144_s28, %s7144_s28, %s7145_s29  }
  0x14   :  { %s7146_s7 = smov [#allocation9]   ;;  %s7147_s9 = smov [#allocation3]  }
  0x15   :  { %s53_s8 = sshll.u32 %s7146_s7, 4  ;;  %s19_s10 = sshll.u32 %s7147_s9, 4  ;;  %s54_s8 = int_to_ptr.vmem [resolvable:$true] %s53_s8  ;;  %s20_s10 = int_to_ptr.vmem [resolvable:$true] %s19_s10 }
  0x16   :  { %s7025_s13 = scalar_lea.hbm %s7456_s3, 36864 }
  0x17   :  { %p7026_p8 = scmp.ne.s32.totalorder %s7456_s3, %s7025_s13  ;;  %p7029_p9 = scmp.lt.u32.totalorder %s7025_s13, %s7456_s3 }
  0x19   :  { %p7031_p10 = pnand %p7029_p9, %p7026_p8 }
  0x1b   :  { %7034 = shalt.err (!%p7031_p10)
}
  0x1c   :  { %s7035_s1 = scalar_lea.vmem %s54_s8, 36864  ;;  %p7040_p12 = scmp.lt.s32.totalorder %s54_s8, %s54_s8 }
  0x1d   :  { %p7036_p11 = scmp.ne.s32.totalorder %s54_s8, %s7035_s1  ;;  %p7041_p13 = scmp.lt.s32.totalorder %s7035_s1, %s7035_s1 }
  0x1f   :  { %p7042_p0 = por %p7041_p13, %p7040_p12 }
  0x21   :  { %p7043_p1 = pnand %p7042_p0, %p7036_p11 }
  0x23   :  { %7046 = shalt.err (!%p7043_p1)
}
  0x24   :  { %s7148_s18 = smov 192   ;;  %s7149_s19 = smov 12  }
  0x25   :  { %59 = dma.hbm_to_vmem [thread:$0]  %s7456_s3, 36864, %s54_s8, [#allocation10], %s7148_s18, %s7148_s18, %s7149_s19  }
  0x26   :  { %s7047_s24 = scalar_lea.hbm %s7453_s0, 768 }
  0x27   :  { %p7048_p2 = scmp.ne.s32.totalorder %s7453_s0, %s7047_s24  ;;  %p7051_p3 = scmp.lt.u32.totalorder %s7047_s24, %s7453_s0 }
  0x29   :  { %p7053_p4 = pnand %p7051_p3, %p7048_p2 }
  0x2b   :  { %7056 = shalt.err (!%p7053_p4)
}
  0x2c   :  { %s7057_s29 = scalar_lea.vmem %s20_s10, 768  ;;  %p7062_p6 = scmp.lt.s32.totalorder %s20_s10, %s20_s10 }
  0x2d   :  { %p7058_p5 = scmp.ne.s32.totalorder %s20_s10, %s7057_s29  ;;  %p7063_p7 = scmp.lt.s32.totalorder %s7057_s29, %s7057_s29 }
  0x2f   :  { %p7064_p8 = por %p7063_p7, %p7062_p6 }
  0x31   :  { %p7065_p9 = pnand %p7064_p8, %p7058_p5 }
  0x33   :  { %7068 = shalt.err (!%p7065_p9)
}
  0x34   :  { %25 = dma.hbm_to_vmem [thread:$0]  %s7453_s0, 768, %s20_s10, [#allocation4], %s7148_s18, %s7148_s18, %s7149_s19  }
  0x35   :  { %s7150_s6 = smov [#allocation8]   ;;  %s7151_s8 = smov [#allocation11]  }
  0x36   :  { %s44_s7 = sshll.u32 %s7150_s6, 4  ;;  %s66_s9 = sshll.u32 %s7151_s8, 4  ;;  %s45_s7 = int_to_ptr.vmem [resolvable:$true] %s44_s7  ;;  %s67_s9 = int_to_ptr.vmem [resolvable:$true] %s66_s9 }
  0x37   :  { %s7069_s13 = scalar_lea.hbm %s7455_s2, 192 }
  0x38   :  { %p7070_p10 = scmp.ne.s32.totalorder %s7455_s2, %s7069_s13  ;;  %p7073_p11 = scmp.lt.u32.totalorder %s7069_s13, %s7455_s2 }
  0x3a   :  { %p7075_p12 = pnand %p7073_p11, %p7070_p10 }
  0x3c   :  { %7078 = shalt.err (!%p7075_p12)
}
  0x3d   :  { %s7079_s0 = scalar_lea.vmem %s45_s7, 192  ;;  %p7084_p0 = scmp.lt.s32.totalorder %s45_s7, %s45_s7 }
  0x3e   :  { %p7080_p13 = scmp.ne.s32.totalorder %s45_s7, %s7079_s0  ;;  %p7085_p1 = scmp.lt.s32.totalorder %s7079_s0, %s7079_s0 }
  0x40   :  { %p7086_p2 = por %p7085_p1, %p7084_p0 }
  0x42   :  { %p7087_p3 = pnand %p7086_p2, %p7080_p13 }
  0x44   :  { %7090 = shalt.err (!%p7087_p3)
}
  0x45   :  { %47 = dma.hbm_to_vmem [thread:$0]  %s7455_s2, 192, %s45_s7, [#allocation7]  }
  0x46   :  { %s7091_s20 = scalar_lea.hbm %s7457_s4, 48 }
  0x47   :  { %p7092_p4 = scmp.ne.s32.totalorder %s7457_s4, %s7091_s20  ;;  %p7095_p5 = scmp.lt.u32.totalorder %s7091_s20, %s7457_s4 }
  0x49   :  { %p7097_p6 = pnand %p7095_p5, %p7092_p4 }
  0x4b   :  { %7100 = shalt.err (!%p7097_p6)
}
  0x4c   :  { %s7101_s25 = scalar_lea.vmem %s67_s9, 48  ;;  %s7105_s26 = scalar_lea.vmem %s67_s9, 64 }
  0x4d   :  { %p7102_p7 = scmp.ne.s32.totalorder %s67_s9, %s7101_s25  ;;  %p7106_p8 = scmp.lt.s32.totalorder %s67_s9, %s67_s9 }
  0x4e   :  { %p7107_p9 = scmp.lt.s32.totalorder %s7105_s26, %s7101_s25 }
  0x50   :  { %p7108_p10 = por %p7107_p9, %p7106_p8 }
  0x52   :  { %p7109_p11 = pnand %p7108_p10, %p7102_p7 }
  0x54   :  { %7112 = shalt.err (!%p7109_p11)
}
  0x55   :  { %69 = dma.hbm_to_vmem [thread:$0]  %s7457_s4, 48, %s67_s9, [#allocation10]  }
  0x56   :  { %7135 = dma.done.wait [#allocation4], 768  }
  0x57   :  { %7136 = vsyncadd [#allocation4], 4294966528 }
  0x58   :  { %7137 = dma.done.wait [#allocation7], 37056  }
  0x59   :  { %7138 = vsyncadd [#allocation7], 4294930240 }
  0x5a   :  { %7139 = dma.done.wait [#allocation10], 36912  }
  0x5b   :  { %7140 = vsyncadd [#allocation10], 4294930384  ;;  %v6172_v0 = vld [vmem:[#allocation6 + $0x4] ss:$48 sps:$4 sm:$0xff]   ;;  %v6174_v1 = vld [vmem:[#allocation6] ss:$48 sps:$4 sm:$0xff]  }
  0x5c   :  { %1951 = vmatprep.subr.bf16.mxu1 %v6172_v0  ;;  %v6175_v2 = vld [vmem:[#allocation6 + $0x64] ss:$48 sps:$4 sm:$0xff]   ;;  %v6177_v3 = vld [vmem:[#allocation6 + $0x60] ss:$48 sps:$4 sm:$0xff]   ;;  %v7252_v59 = vld [vmem:[#allocation3 + $0x1c] ss:$12 sps:$4 sm:$0xff]  }
  0x5d   :  { %1952 = vmatpush1.bf16.msra.mxu1 %v6174_v1  ;;  %v6178_v4 = vld [vmem:[#allocation6 + $0xc4] ss:$48 sps:$4 sm:$0xff]   ;;  %v6180_v5 = vld [vmem:[#allocation6 + $0xc0] ss:$48 sps:$4 sm:$0xff]   ;;  %s7153_s4 = smov [#allocation12]  }
  0x5e   :  { %1953 = vmatprep.subr.bf16.mxu1 %v6175_v2  ;;  %v6181_v6 = vld [vmem:[#allocation6 + $0x124] ss:$48 sps:$4 sm:$0xff]   ;;  %v6183_v7 = vld [vmem:[#allocation6 + $0x120] ss:$48 sps:$4 sm:$0xff]   ;;  %s5259_s28 = sshll.u32 %s7153_s4, 4  ;;  %s5260_s28 = int_to_ptr.vmem [resolvable:$true] %s5259_s28 }
  0x5f   :  { %v6184_v8 = vld [vmem:[#allocation6 + $0x184] ss:$48 sps:$4 sm:$0xff]   ;;  %v6186_v9 = vld [vmem:[#allocation6 + $0x180] ss:$48 sps:$4 sm:$0xff]   ;;  %s7113_s29 = scalar_lea.vmem %s5260_s28, 1536  ;;  %p7118_p13 = scmp.lt.s32.totalorder %s5260_s28, %s5260_s28 }
  0x60   :  { %v6187_v10 = vld [vmem:[#allocation6 + $0x1e4] ss:$48 sps:$4 sm:$0xff]   ;;  %v6189_v11 = vld [vmem:[#allocation6 + $0x1e0] ss:$48 sps:$4 sm:$0xff]   ;;  %p7114_p12 = scmp.ne.s32.totalorder %s5260_s28, %s7113_s29  ;;  %p7119_p0 = scmp.lt.s32.totalorder %s7113_s29, %s7113_s29 }
  0x61   :  { %1954 = vmatpush1.bf16.msra.mxu1 %v6177_v3  ;;  %v6190_v12 = vld [vmem:[#allocation6 + $0x244] ss:$48 sps:$4 sm:$0xff]   ;;  %v6192_v14 = vld [vmem:[#allocation6 + $0x240] ss:$48 sps:$4 sm:$0xff]  }
  0x62   :  { %1955 = vmatprep.subr.bf16.mxu1 %v6178_v4  ;;  %v6217_v13 = vld [vmem:[#allocation6 + $0x14] ss:$48 sps:$4 sm:$0xff]   ;;  %v6221_v16 = vld [vmem:[#allocation6 + $0x10] ss:$48 sps:$4 sm:$0xff]   ;;  %p7120_p1 = por %p7119_p0, %p7118_p13 }
  0x63   :  { %v6193_v15 = vld [vmem:[#allocation6 + $0x2a4] ss:$48 sps:$4 sm:$0xff]   ;;  %2163 = vmatprep.subr.bf16.mxu0 %v6217_v13  ;;  %v6195_v19 = vld [vmem:[#allocation6 + $0x2a0] ss:$48 sps:$4 sm:$0xff]  }
  0x64   :  { %v6223_v17 = vld [vmem:[#allocation6 + $0x74] ss:$48 sps:$4 sm:$0xff]   ;;  %2164 = vmatpush1.bf16.msra.mxu0 %v6221_v16  ;;  %v6230_v20 = vld [vmem:[#allocation6 + $0x70] ss:$48 sps:$4 sm:$0xff]   ;;  %p7121_p2 = pnand %p7120_p1, %p7114_p12 }
  0x65   :  { %1956 = vmatpush1.bf16.msra.mxu1 %v6180_v5  ;;  %v7246_v18 = vld [vmem:[#allocation3 + $0x4] ss:$12 sps:$4 sm:$0xff]   ;;  %2165 = vmatprep.subr.bf16.mxu0 %v6223_v17  ;;  %v7250_v58 = vld [vmem:[#allocation3] ss:$12 sps:$4 sm:$0xff]  }
  0x66   :  { %1957 = vmatprep.subr.bf16.mxu1 %v6181_v6  ;;  %1983 = vmatprep.mubr.bf16.mxu1 %v7246_v18  ;;  %v6232_v21 = vld [vmem:[#allocation6 + $0xd4] ss:$48 sps:$4 sm:$0xff]   ;;  %v6237_v23 = vld [vmem:[#allocation6 + $0xd0] ss:$48 sps:$4 sm:$0xff]  }
  0x67   :  { %2195 = vmatprep.mubr.bf16.mxu0 %v7246_v18  ;;  %v6196_v22 = vld [vmem:[#allocation6 + $0x304] ss:$48 sps:$4 sm:$0xff]   ;;  %v6198_v25 = vld [vmem:[#allocation6 + $0x300] ss:$48 sps:$4 sm:$0xff]  }
  0x68   :  { %2166 = vmatpush1.bf16.msra.mxu0 %v6230_v20  ;;  %v6238_v24 = vld [vmem:[#allocation6 + $0x134] ss:$48 sps:$4 sm:$0xff]   ;;  %v6243_v27 = vld [vmem:[#allocation6 + $0x130] ss:$48 sps:$4 sm:$0xff]  }
  0x69   :  { %1958 = vmatpush1.bf16.msra.mxu1 %v6183_v7  ;;  %2167 = vmatprep.subr.bf16.mxu0 %v6232_v21  ;;  %v6199_v26 = vld [vmem:[#allocation6 + $0x364] ss:$48 sps:$4 sm:$0xff]   ;;  %v6201_v29 = vld [vmem:[#allocation6 + $0x360] ss:$48 sps:$4 sm:$0xff]  }
  0x6a   :  { %1959 = vmatprep.subr.bf16.mxu1 %v6184_v8  ;;  %v6244_v28 = vld [vmem:[#allocation6 + $0x194] ss:$48 sps:$4 sm:$0xff]   ;;  %v6249_v31 = vld [vmem:[#allocation6 + $0x190] ss:$48 sps:$4 sm:$0xff]  }
  0x6b   :  { %v6202_v30 = vld [vmem:[#allocation6 + $0x3c4] ss:$48 sps:$4 sm:$0xff]   ;;  %v6204_v33 = vld [vmem:[#allocation6 + $0x3c0] ss:$48 sps:$4 sm:$0xff]  }
  0x6c   :  { %2168 = vmatpush1.bf16.msra.mxu0 %v6237_v23  ;;  %v6250_v32 = vld [vmem:[#allocation6 + $0x1f4] ss:$48 sps:$4 sm:$0xff]   ;;  %v6255_v35 = vld [vmem:[#allocation6 + $0x1f0] ss:$48 sps:$4 sm:$0xff]  }
  0x6d   :  { %1960 = vmatpush1.bf16.msra.mxu1 %v6186_v9  ;;  %2169 = vmatprep.subr.bf16.mxu0 %v6238_v24  ;;  %v6205_v34 = vld [vmem:[#allocation6 + $0x424] ss:$48 sps:$4 sm:$0xff]   ;;  %v6207_v37 = vld [vmem:[#allocation6 + $0x420] ss:$48 sps:$4 sm:$0xff]   ;;  %v7152_v9 = vmov 0  }
  0x6e   :  { %1961 = vmatprep.subr.bf16.mxu1 %v6187_v10  ;;  %v6256_v36 = vld [vmem:[#allocation6 + $0x254] ss:$48 sps:$4 sm:$0xff]   ;;  %v6261_v39 = vld [vmem:[#allocation6 + $0x250] ss:$48 sps:$4 sm:$0xff]  }
  0x6f   :  { %v6208_v38 = vld [vmem:[#allocation6 + $0x484] ss:$48 sps:$4 sm:$0xff]   ;;  %v6210_v41 = vld [vmem:[#allocation6 + $0x480] ss:$48 sps:$4 sm:$0xff]  }
  0x70   :  { %2170 = vmatpush1.bf16.msra.mxu0 %v6243_v27  ;;  %v6264_v40 = vld [vmem:[#allocation6 + $0x2b4] ss:$48 sps:$4 sm:$0xff]   ;;  %v6270_v43 = vld [vmem:[#allocation6 + $0x2b0] ss:$48 sps:$4 sm:$0xff]   ;;  %v6282_v27 = vld [vmem:[#allocation6 + $0xc] ss:$48 sps:$4 sm:$0xff]  }
  0x71   :  { %1962 = vmatpush1.bf16.msra.mxu1 %v6189_v11  ;;  %2171 = vmatprep.subr.bf16.mxu0 %v6244_v28  ;;  %v6211_v42 = vld [vmem:[#allocation6 + $0x4e4] ss:$48 sps:$4 sm:$0xff]   ;;  %v6213_v45 = vld [vmem:[#allocation6 + $0x4e0] ss:$48 sps:$4 sm:$0xff]  }
  0x72   :  { %1963 = vmatprep.subr.bf16.mxu1 %v6190_v12  ;;  %v6271_v44 = vld [vmem:[#allocation6 + $0x314] ss:$48 sps:$4 sm:$0xff]   ;;  %v6276_v47 = vld [vmem:[#allocation6 + $0x310] ss:$48 sps:$4 sm:$0xff]  }
  0x73   :  { %v6214_v46 = vld [vmem:[#allocation6 + $0x544] ss:$48 sps:$4 sm:$0xff]   ;;  %v6216_v49 = vld [vmem:[#allocation6 + $0x540] ss:$48 sps:$4 sm:$0xff]  }
  0x74   :  { %2172 = vmatpush1.bf16.msra.mxu0 %v6249_v31  ;;  %v6277_v48 = vld [vmem:[#allocation6 + $0x374] ss:$48 sps:$4 sm:$0xff]   ;;  %v6283_v51 = vld [vmem:[#allocation6 + $0x370] ss:$48 sps:$4 sm:$0xff]   ;;  %v6280_v31 = vld [vmem:[#allocation6 + $0x8] ss:$48 sps:$4 sm:$0xff]  }
  0x75   :  { %1964 = vmatpush1.bf16.msra.mxu1 %v6192_v14  ;;  %2173 = vmatprep.subr.bf16.mxu0 %v6250_v32  ;;  %v6219_v50 = vld [vmem:[#allocation6 + $0x5a4] ss:$48 sps:$4 sm:$0xff]   ;;  %v6222_v53 = vld [vmem:[#allocation6 + $0x5a0] ss:$48 sps:$4 sm:$0xff]   ;;  %v6288_v32 = vld [vmem:[#allocation6 + $0x6c] ss:$48 sps:$4 sm:$0xff]  }
  0x76   :  { %1965 = vmatprep.subr.bf16.mxu1 %v6193_v15  ;;  %v6284_v52 = vld [vmem:[#allocation6 + $0x3d4] ss:$48 sps:$4 sm:$0xff]   ;;  %v6289_v55 = vld [vmem:[#allocation6 + $0x3d0] ss:$48 sps:$4 sm:$0xff]  }
  0x77   :  { %v6229_v54 = vld [vmem:[#allocation6 + $0x604] ss:$48 sps:$4 sm:$0xff]   ;;  %v6227_v56 = vld [vmem:[#allocation6 + $0x600] ss:$48 sps:$4 sm:$0xff]  }
  0x78   :  { %2174 = vmatpush1.bf16.msra.mxu0 %v6255_v35  ;;  %v6290_v57 = vld [vmem:[#allocation6 + $0x434] ss:$48 sps:$4 sm:$0xff]   ;;  %v6296_v61 = vld [vmem:[#allocation6 + $0x430] ss:$48 sps:$4 sm:$0xff]   ;;  %v6286_v35 = vld [vmem:[#allocation6 + $0x68] ss:$48 sps:$4 sm:$0xff]  }
  0x79   :  { %1966 = vmatpush1.bf16.msra.mxu1 %v6195_v19  ;;  %2175 = vmatprep.subr.bf16.mxu0 %v6256_v36  ;;  %v6236_v60 = vld [vmem:[#allocation6 + $0x664] ss:$48 sps:$4 sm:$0xff]   ;;  %v6234_v63 = vld [vmem:[#allocation6 + $0x660] ss:$48 sps:$4 sm:$0xff]   ;;  %v6295_v36 = vld [vmem:[#allocation6 + $0xcc] ss:$48 sps:$4 sm:$0xff]  }
  0x7a   :  { %1967 = vmatprep.subr.bf16.mxu1 %v6196_v22  ;;  %v6297_v62 = vld [vmem:[#allocation6 + $0x494] ss:$48 sps:$4 sm:$0xff]   ;;  %v6302_v1 = vld [vmem:[#allocation6 + $0x490] ss:$48 sps:$4 sm:$0xff]  }
  0x7b   :  { %v6242_v0 = vld [vmem:[#allocation6 + $0x6c4] ss:$48 sps:$4 sm:$0xff]   ;;  %v6240_v4 = vld [vmem:[#allocation6 + $0x6c0] ss:$48 sps:$4 sm:$0xff]  }
  0x7c   :  { %2176 = vmatpush1.bf16.msra.mxu0 %v6261_v39  ;;  %v6303_v2 = vld [vmem:[#allocation6 + $0x4f4] ss:$48 sps:$4 sm:$0xff]   ;;  %v6308_v6 = vld [vmem:[#allocation6 + $0x4f0] ss:$48 sps:$4 sm:$0xff]  }
  0x7d   :  { %1968 = vmatpush1.bf16.msra.mxu1 %v6198_v25  ;;  %2177 = vmatprep.subr.bf16.mxu0 %v6264_v40  ;;  %v7256_v3 = vld [vmem:[#allocation3 + $0x18] ss:$12 sps:$4 sm:$0xff]   ;;  %v6246_v8 = vld [vmem:[#allocation6 + $0x720] ss:$48 sps:$4 sm:$0xff]  }
  0x7e   :  { %1969 = vmatprep.subr.bf16.mxu1 %v6199_v26  ;;  %v6248_v5 = vld [vmem:[#allocation6 + $0x724] ss:$48 sps:$4 sm:$0xff]   ;;  %v6314_v11 = vld [vmem:[#allocation6 + $0x550] ss:$48 sps:$4 sm:$0xff]   ;;  %v6293_v40 = vld [vmem:[#allocation6 + $0xc8] ss:$48 sps:$4 sm:$0xff]  }
  0x7f   :  { %v6309_v7 = vld [vmem:[#allocation6 + $0x554] ss:$48 sps:$4 sm:$0xff]   ;;  %v6252_v13 = vld [vmem:[#allocation6 + $0x780] ss:$48 sps:$4 sm:$0xff]  }
  0x80   :  { %2178 = vmatpush1.bf16.msra.mxu0 %v6270_v43  ;;  %v6254_v10 = vld [vmem:[#allocation6 + $0x784] ss:$48 sps:$4 sm:$0xff]   ;;  %v6320_v15 = vld [vmem:[#allocation6 + $0x5b0] ss:$48 sps:$4 sm:$0xff]  }
  0x81   :  { %1970 = vmatpush1.bf16.msra.mxu1 %v6201_v29  ;;  %2179 = vmatprep.subr.bf16.mxu0 %v6271_v44  ;;  %v6315_v12 = vld [vmem:[#allocation6 + $0x5b4] ss:$48 sps:$4 sm:$0xff]   ;;  %v6258_v17 = vld [vmem:[#allocation6 + $0x7e0] ss:$48 sps:$4 sm:$0xff]   ;;  %v6299_v44 = vld [vmem:[#allocation6 + $0x128] ss:$48 sps:$4 sm:$0xff]  }
  0x82   :  { %1971 = vmatprep.subr.bf16.mxu1 %v6202_v30  ;;  %v6260_v14 = vld [vmem:[#allocation6 + $0x7e4] ss:$48 sps:$4 sm:$0xff]   ;;  %v6321_v20 = vld [vmem:[#allocation6 + $0x610] ss:$48 sps:$4 sm:$0xff]  }
  0x83   :  { %v6323_v16 = vld [vmem:[#allocation6 + $0x614] ss:$48 sps:$4 sm:$0xff]   ;;  %v6267_v22 = vld [vmem:[#allocation6 + $0x840] ss:$48 sps:$4 sm:$0xff]  }
  0x84   :  { %2180 = vmatpush1.bf16.msra.mxu0 %v6276_v47  ;;  %v6269_v19 = vld [vmem:[#allocation6 + $0x844] ss:$48 sps:$4 sm:$0xff]   ;;  %v6327_v24 = vld [vmem:[#allocation6 + $0x670] ss:$48 sps:$4 sm:$0xff]  }
  0x85   :  { %1972 = vmatpush1.bf16.msra.mxu1 %v6204_v33  ;;  %2181 = vmatprep.subr.bf16.mxu0 %v6277_v48  ;;  %v6329_v21 = vld [vmem:[#allocation6 + $0x674] ss:$48 sps:$4 sm:$0xff]   ;;  %v6273_v26 = vld [vmem:[#allocation6 + $0x8a0] ss:$48 sps:$4 sm:$0xff]   ;;  %v6305_v48 = vld [vmem:[#allocation6 + $0x188] ss:$48 sps:$4 sm:$0xff]  }
  0x86   :  { %1973 = vmatprep.subr.bf16.mxu1 %v6205_v34  ;;  %v6275_v23 = vld [vmem:[#allocation6 + $0x8a4] ss:$48 sps:$4 sm:$0xff]   ;;  %v6333_v28 = vld [vmem:[#allocation6 + $0x6d0] ss:$48 sps:$4 sm:$0xff]  }
  0x87   :  { %v6335_v25 = vld [vmem:[#allocation6 + $0x6d4] ss:$48 sps:$4 sm:$0xff]   ;;  %v6339_v33 = vld [vmem:[#allocation6 + $0x730] ss:$48 sps:$4 sm:$0xff]  }
  0x88   :  { %2182 = vmatpush1.bf16.msra.mxu0 %v6283_v51  ;;  %v6341_v29 = vld [vmem:[#allocation6 + $0x734] ss:$48 sps:$4 sm:$0xff]   ;;  %v7268_v39 = vld [vmem:[#allocation3 + $0x20] ss:$12 sps:$4 sm:$0xff]  }
  0x89   :  { %1974 = vmatpush1.bf16.msra.mxu1 %v6207_v37  ;;  %2183 = vmatprep.subr.bf16.mxu0 %v6284_v52  ;;  %v7262_v30 = vld [vmem:[#allocation3 + $0x8] ss:$12 sps:$4 sm:$0xff]   ;;  %v6345_v37 = vld [vmem:[#allocation6 + $0x790] ss:$48 sps:$4 sm:$0xff]  }
  0x8a   :  { %1975 = vmatprep.subr.bf16.mxu1 %v6208_v38  ;;  %v6347_v34 = vld [vmem:[#allocation6 + $0x794] ss:$48 sps:$4 sm:$0xff]   ;;  %v6311_v52 = vld [vmem:[#allocation6 + $0x1e8] ss:$48 sps:$4 sm:$0xff]  }
  0x8b   :  { %v6353_v38 = vld [vmem:[#allocation6 + $0x7f4] ss:$48 sps:$4 sm:$0xff]  }
  0x8c   :  { %2184 = vmatpush1.bf16.msra.mxu0 %v6289_v55  ;;  %v6359_v43 = vld [vmem:[#allocation6 + $0x854] ss:$48 sps:$4 sm:$0xff]  }
  0x8d   :  { %1976 = vmatpush1.bf16.msra.mxu1 %v6210_v41  ;;  %2185 = vmatprep.subr.bf16.mxu0 %v6290_v57  ;;  %v6301_v41 = vld [vmem:[#allocation6 + $0x12c] ss:$48 sps:$4 sm:$0xff]   ;;  %v6365_v47 = vld [vmem:[#allocation6 + $0x8b4] ss:$48 sps:$4 sm:$0xff]  }
  0x8e   :  { %1977 = vmatprep.subr.bf16.mxu1 %v6211_v42  ;;  %v6351_v42 = vld [vmem:[#allocation6 + $0x7f0] ss:$48 sps:$4 sm:$0xff]   ;;  %v6371_v51 = vld [vmem:[#allocation6 + $0x24] ss:$48 sps:$4 sm:$0xff]   ;;  %v6326_v57 = vld [vmem:[#allocation6 + $0x2ac] ss:$48 sps:$4 sm:$0xff]  }
  0x8f   :  { %v6377_v55 = vld [vmem:[#allocation6 + $0x84] ss:$48 sps:$4 sm:$0xff]  }
  0x90   :  { %2186 = vmatpush1.bf16.msra.mxu0 %v6296_v61  ;;  %v6383_v61 = vld [vmem:[#allocation6 + $0xe4] ss:$48 sps:$4 sm:$0xff]  }
  0x91   :  { %1978 = vmatpush1.bf16.msra.mxu1 %v6213_v45  ;;  %2187 = vmatprep.subr.bf16.mxu0 %v6297_v62  ;;  %v6307_v45 = vld [vmem:[#allocation6 + $0x18c] ss:$48 sps:$4 sm:$0xff]   ;;  %v6324_v62 = vld [vmem:[#allocation6 + $0x2a8] ss:$48 sps:$4 sm:$0xff]  }
  0x92   :  { %1979 = vmatprep.subr.bf16.mxu1 %v6214_v46  ;;  %v6357_v46 = vld [vmem:[#allocation6 + $0x850] ss:$48 sps:$4 sm:$0xff]  }
  0x94   :  { %2188 = vmatpush1.bf16.msra.mxu0 %v6302_v1  ;;  %v6389_v1 = vld [vmem:[#allocation6 + $0x144] ss:$48 sps:$4 sm:$0xff]  }
  0x95   :  { %1980 = vmatpush1.bf16.msra.mxu1 %v6216_v49  ;;  %2189 = vmatprep.subr.bf16.mxu0 %v6303_v2  ;;  %v6313_v49 = vld [vmem:[#allocation6 + $0x1ec] ss:$48 sps:$4 sm:$0xff]   ;;  %v6330_v2 = vld [vmem:[#allocation6 + $0x308] ss:$48 sps:$4 sm:$0xff]  }
  0x96   :  { %1981 = vmatprep.subr.bf16.mxu1 %v6219_v50  ;;  %v6363_v50 = vld [vmem:[#allocation6 + $0x8b0] ss:$48 sps:$4 sm:$0xff]  }
  0x98   :  { %2190 = vmatpush1.bf16.msra.mxu0 %v6308_v6  ;;  %v6395_v6 = vld [vmem:[#allocation6 + $0x1a4] ss:$48 sps:$4 sm:$0xff]  }
  0x99   :  { %1982 = vmatpush1.bf16.msra.mxu1 %v6222_v53  ;;  %2191 = vmatprep.subr.bf16.mxu0 %v6309_v7  ;;  %v6319_v53 = vld [vmem:[#allocation6 + $0x24c] ss:$48 sps:$4 sm:$0xff]   ;;  %v6336_v7 = vld [vmem:[#allocation6 + $0x368] ss:$48 sps:$4 sm:$0xff]  }
  0x9a   :  { %2004 = vmatprep.subr.bf16.mxu1 %v6229_v54  ;;  %v6369_v54 = vld [vmem:[#allocation6 + $0x20] ss:$48 sps:$4 sm:$0xff]  }
  0x9c   :  { %1984 = vmatmul.mubr.bf16.vlgmr.msra.gmra.mrb[0].mxu1 %v7250_v58  ;;  %2192 = vmatpush1.bf16.msra.mxu0 %v6314_v11  ;;  %v6401_v11 = vld [vmem:[#allocation6 + $0x204] ss:$48 sps:$4 sm:$0xff]  }
  0x9d   :  { %2005 = vmatpush1.bf16.msra.mxu1 %v6227_v56  ;;  %1993 = vmatprep.mubr.bf16.mxu1 %v7252_v59  ;;  %v6317_v56 = vld [vmem:[#allocation6 + $0x248] ss:$48 sps:$4 sm:$0xff]  }
  0x9e   :  { %2006 = vmatprep.subr.bf16.mxu1 %v6236_v60  ;;  %2193 = vmatprep.subr.bf16.mxu0 %v6315_v12  ;;  %v6375_v60 = vld [vmem:[#allocation6 + $0x80] ss:$48 sps:$4 sm:$0xff]   ;;  %v6342_v12 = vld [vmem:[#allocation6 + $0x3c8] ss:$48 sps:$4 sm:$0xff]  }
  0xa0   :  { %2194 = vmatpush1.bf16.msra.mxu0 %v6320_v15  ;;  %v6407_v15 = vld [vmem:[#allocation6 + $0x264] ss:$48 sps:$4 sm:$0xff]  }
  0xa1   :  { %2007 = vmatpush1.bf16.msra.mxu1 %v6234_v63  ;;  %2216 = vmatprep.subr.bf16.mxu0 %v6323_v16  ;;  %v6332_v63 = vld [vmem:[#allocation6 + $0x30c] ss:$48 sps:$4 sm:$0xff]   ;;  %v6348_v16 = vld [vmem:[#allocation6 + $0x428] ss:$48 sps:$4 sm:$0xff]  }
  0xa2   :  { %2008 = vmatprep.subr.bf16.mxu1 %v6242_v0  ;;  %v6381_v0 = vld [vmem:[#allocation6 + $0xe0] ss:$48 sps:$4 sm:$0xff]  }
  0xa3   :  { %2196 = vmatmul.mubr.bf16.vlgmr.msra.gmra.mrb[0].mxu0 %v7250_v58 }
  0xa4   :  { %1994 = vmatmul.mubr.bf16.gmra.mrb[4].mxu1 %v7256_v3  ;;  %2217 = vmatpush1.bf16.msra.mxu0 %v6321_v20  ;;  %v6354_v20 = vld [vmem:[#allocation6 + $0x488] ss:$48 sps:$4 sm:$0xff]  }
  0xa5   :  { %2009 = vmatpush1.bf16.msra.mxu1 %v6240_v4  ;;  %2036 = vmatprep.mubr.bf16.mxu1 %v7152_v9  ;;  %v6338_v4 = vld [vmem:[#allocation6 + $0x36c] ss:$48 sps:$4 sm:$0xff]  }
  0xa6   :  { %2010 = vmatprep.subr.bf16.mxu1 %v6248_v5  ;;  %2218 = vmatprep.subr.bf16.mxu0 %v6329_v21  ;;  %v6387_v5 = vld [vmem:[#allocation6 + $0x140] ss:$48 sps:$4 sm:$0xff]   ;;  %v6362_v21 = vld [vmem:[#allocation6 + $0x4ec] ss:$48 sps:$4 sm:$0xff]  }
  0xa7   :  { %2205 = vmatprep.mubr.bf16.mxu0 %v7252_v59 }
  0xa8   :  { %2219 = vmatpush1.bf16.msra.mxu0 %v6327_v24  ;;  %v6360_v24 = vld [vmem:[#allocation6 + $0x4e8] ss:$48 sps:$4 sm:$0xff]  }
  0xa9   :  { %2011 = vmatpush1.bf16.msra.mxu1 %v6246_v8  ;;  %2220 = vmatprep.subr.bf16.mxu0 %v6335_v25  ;;  %v6344_v8 = vld [vmem:[#allocation6 + $0x3cc] ss:$48 sps:$4 sm:$0xff]  }
  0xaa   :  { %2012 = vmatprep.subr.bf16.mxu1 %v6254_v10  ;;  %v6393_v10 = vld [vmem:[#allocation6 + $0x1a0] ss:$48 sps:$4 sm:$0xff]   ;;  %v6368_v25 = vld [vmem:[#allocation6 + $0x54c] ss:$48 sps:$4 sm:$0xff]  }
  0xab   :  { %2206 = vmatmul.mubr.bf16.gmra.mrb[4].mxu0 %v7256_v3 }
  0xac   :  { %2221 = vmatpush1.bf16.msra.mxu0 %v6333_v28  ;;  %2248 = vmatprep.mubr.bf16.mxu0 %v7152_v9  ;;  %v6366_v28 = vld [vmem:[#allocation6 + $0x548] ss:$48 sps:$4 sm:$0xff]  }
  0xad   :  { %2013 = vmatpush1.bf16.msra.mxu1 %v6252_v13  ;;  %2222 = vmatprep.subr.bf16.mxu0 %v6341_v29  ;;  %v6350_v13 = vld [vmem:[#allocation6 + $0x42c] ss:$48 sps:$4 sm:$0xff]  }
  0xae   :  { %2014 = vmatprep.subr.bf16.mxu1 %v6260_v14  ;;  %v6399_v14 = vld [vmem:[#allocation6 + $0x200] ss:$48 sps:$4 sm:$0xff]   ;;  %v6374_v29 = vld [vmem:[#allocation6 + $0x5ac] ss:$48 sps:$4 sm:$0xff]  }
  0xb0   :  { %2223 = vmatpush1.bf16.msra.mxu0 %v6339_v33  ;;  %v6372_v33 = vld [vmem:[#allocation6 + $0x5a8] ss:$48 sps:$4 sm:$0xff]  }
  0xb1   :  { %2015 = vmatpush1.bf16.msra.mxu1 %v6258_v17  ;;  %2224 = vmatprep.subr.bf16.mxu0 %v6347_v34  ;;  %v6405_v17 = vld [vmem:[#allocation6 + $0x260] ss:$48 sps:$4 sm:$0xff]   ;;  %v6380_v34 = vld [vmem:[#allocation6 + $0x60c] ss:$48 sps:$4 sm:$0xff]  }
  0xb2   :  { %2016 = vmatprep.subr.bf16.mxu1 %v6269_v19  ;;  %v6413_v19 = vld [vmem:[#allocation6 + $0x2c4] ss:$48 sps:$4 sm:$0xff]  }
  0xb4   :  { %2225 = vmatpush1.bf16.msra.mxu0 %v6345_v37  ;;  %v6378_v37 = vld [vmem:[#allocation6 + $0x608] ss:$48 sps:$4 sm:$0xff]  }
  0xb5   :  { %2017 = vmatpush1.bf16.msra.mxu1 %v6267_v22  ;;  %2226 = vmatprep.subr.bf16.mxu0 %v6353_v38  ;;  %v6411_v22 = vld [vmem:[#allocation6 + $0x2c0] ss:$48 sps:$4 sm:$0xff]   ;;  %v6386_v38 = vld [vmem:[#allocation6 + $0x66c] ss:$48 sps:$4 sm:$0xff]  }
  0xb6   :  { %2018 = vmatprep.subr.bf16.mxu1 %v6275_v23  ;;  %v6419_v23 = vld [vmem:[#allocation6 + $0x324] ss:$48 sps:$4 sm:$0xff]  }
  0xb8   :  { %2227 = vmatpush1.bf16.msra.mxu0 %v6351_v42  ;;  %v6384_v42 = vld [vmem:[#allocation6 + $0x668] ss:$48 sps:$4 sm:$0xff]  }
  0xb9   :  { %2019 = vmatpush1.bf16.msra.mxu1 %v6273_v26  ;;  %2228 = vmatprep.subr.bf16.mxu0 %v6359_v43  ;;  %v6417_v26 = vld [vmem:[#allocation6 + $0x320] ss:$48 sps:$4 sm:$0xff]   ;;  %v6392_v43 = vld [vmem:[#allocation6 + $0x6cc] ss:$48 sps:$4 sm:$0xff]  }
  0xba   :  { %2057 = vmatprep.subr.bf16.mxu1 %v6282_v27  ;;  %v6425_v27 = vld [vmem:[#allocation6 + $0x384] ss:$48 sps:$4 sm:$0xff]  }
  0xbc   :  { %2037 = vmatmul.mubr.bf16.vlgmr.msra.gmra.mrb[0].mxu1 %v7262_v30  ;;  %2229 = vmatpush1.bf16.msra.mxu0 %v6357_v46  ;;  %v6390_v46 = vld [vmem:[#allocation6 + $0x6c8] ss:$48 sps:$4 sm:$0xff]  }
  0xbd   :  { %2058 = vmatpush1.bf16.msra.mxu1 %v6280_v31  ;;  %2046 = vmatprep.mubr.bf16.mxu1 %v7152_v9  ;;  %v6423_v31 = vld [vmem:[#allocation6 + $0x380] ss:$48 sps:$4 sm:$0xff]  }
  0xbe   :  { %2059 = vmatprep.subr.bf16.mxu1 %v6288_v32  ;;  %2230 = vmatprep.subr.bf16.mxu0 %v6365_v47  ;;  %v6431_v32 = vld [vmem:[#allocation6 + $0x3e4] ss:$48 sps:$4 sm:$0xff]   ;;  %v6398_v47 = vld [vmem:[#allocation6 + $0x72c] ss:$48 sps:$4 sm:$0xff]  }
  0xc0   :  { %2231 = vmatpush1.bf16.msra.mxu0 %v6363_v50  ;;  %v6396_v50 = vld [vmem:[#allocation6 + $0x728] ss:$48 sps:$4 sm:$0xff]  }
  0xc1   :  { %2060 = vmatpush1.bf16.msra.mxu1 %v6286_v35  ;;  %2375 = vmatprep.subr.bf16.mxu0 %v6371_v51  ;;  %v6429_v35 = vld [vmem:[#allocation6 + $0x3e0] ss:$48 sps:$4 sm:$0xff]   ;;  %v6404_v51 = vld [vmem:[#allocation6 + $0x78c] ss:$48 sps:$4 sm:$0xff]  }
  0xc2   :  { %2061 = vmatprep.subr.bf16.mxu1 %v6295_v36  ;;  %v6437_v36 = vld [vmem:[#allocation6 + $0x444] ss:$48 sps:$4 sm:$0xff]  }
  0xc3   :  { %2249 = vmatmul.mubr.bf16.vlgmr.msra.gmra.mrb[0].mxu0 %v7262_v30 }
  0xc4   :  { %2047 = vmatmul.mubr.bf16.gmra.mrb[4].mxu1 %v7268_v39  ;;  %2376 = vmatpush1.bf16.msra.mxu0 %v6369_v54  ;;  %v6402_v54 = vld [vmem:[#allocation6 + $0x788] ss:$48 sps:$4 sm:$0xff]  }
  0xc5   :  { %2062 = vmatpush1.bf16.msra.mxu1 %v6293_v40  ;;  %2089 = vmatprep.mubr.bf16.mxu1 %v7246_v18  ;;  %v6435_v40 = vld [vmem:[#allocation6 + $0x440] ss:$48 sps:$4 sm:$0xff]  }
  0xc6   :  { %2063 = vmatprep.subr.bf16.mxu1 %v6301_v41  ;;  %2377 = vmatprep.subr.bf16.mxu0 %v6377_v55  ;;  %v6443_v41 = vld [vmem:[#allocation6 + $0x4a4] ss:$48 sps:$4 sm:$0xff]   ;;  %v6410_v55 = vld [vmem:[#allocation6 + $0x7ec] ss:$48 sps:$4 sm:$0xff]  }
  0xc7   :  { %2258 = vmatprep.mubr.bf16.mxu0 %v7152_v9 }
  0xc8   :  { %2378 = vmatpush1.bf16.msra.mxu0 %v6375_v60  ;;  %v6408_v60 = vld [vmem:[#allocation6 + $0x7e8] ss:$48 sps:$4 sm:$0xff]  }
  0xc9   :  { %2064 = vmatpush1.bf16.msra.mxu1 %v6299_v44  ;;  %2379 = vmatprep.subr.bf16.mxu0 %v6383_v61  ;;  %v6441_v44 = vld [vmem:[#allocation6 + $0x4a0] ss:$48 sps:$4 sm:$0xff]   ;;  %v6416_v61 = vld [vmem:[#allocation6 + $0x84c] ss:$48 sps:$4 sm:$0xff]  }
  0xca   :  { %2065 = vmatprep.subr.bf16.mxu1 %v6307_v45  ;;  %v6449_v45 = vld [vmem:[#allocation6 + $0x504] ss:$48 sps:$4 sm:$0xff]  }
  0xcb   :  { %2259 = vmatmul.mubr.bf16.gmra.mrb[4].mxu0 %v7268_v39 }
  0xcc   :  { %2380 = vmatpush1.bf16.msra.mxu0 %v6381_v0  ;;  %2407 = vmatprep.mubr.bf16.mxu0 %v7246_v18  ;;  %v6356_v18 = vld [vmem:[#allocation6 + $0x48c] ss:$48 sps:$4 sm:$0xff]   ;;  %v6414_v0 = vld [vmem:[#allocation6 + $0x848] ss:$48 sps:$4 sm:$0xff]  }
  0xcd   :  { %2066 = vmatpush1.bf16.msra.mxu1 %v6305_v48  ;;  %2381 = vmatprep.subr.bf16.mxu0 %v6389_v1  ;;  %v6447_v48 = vld [vmem:[#allocation6 + $0x500] ss:$48 sps:$4 sm:$0xff]   ;;  %v6422_v1 = vld [vmem:[#allocation6 + $0x8ac] ss:$48 sps:$4 sm:$0xff]  }
  0xce   :  { %2067 = vmatprep.subr.bf16.mxu1 %v6313_v49  ;;  %v6455_v49 = vld [vmem:[#allocation6 + $0x564] ss:$48 sps:$4 sm:$0xff]  }
  0xd0   :  { %2382 = vmatpush1.bf16.msra.mxu0 %v6387_v5  ;;  %v6420_v5 = vld [vmem:[#allocation6 + $0x8a8] ss:$48 sps:$4 sm:$0xff]  }
  0xd1   :  { %2068 = vmatpush1.bf16.msra.mxu1 %v6311_v52  ;;  %2383 = vmatprep.subr.bf16.mxu0 %v6395_v6  ;;  %v6453_v52 = vld [vmem:[#allocation6 + $0x560] ss:$48 sps:$4 sm:$0xff]   ;;  %v6428_v6 = vld [vmem:[#allocation6 + $0x1c] ss:$48 sps:$4 sm:$0xff]  }
  0xd2   :  { %2069 = vmatprep.subr.bf16.mxu1 %v6319_v53  ;;  %v6461_v53 = vld [vmem:[#allocation6 + $0x5c4] ss:$48 sps:$4 sm:$0xff]  }
  0xd4   :  { %2384 = vmatpush1.bf16.msra.mxu0 %v6393_v10  ;;  %v6426_v10 = vld [vmem:[#allocation6 + $0x18] ss:$48 sps:$4 sm:$0xff]  }
  0xd5   :  { %2070 = vmatpush1.bf16.msra.mxu1 %v6317_v56  ;;  %2385 = vmatprep.subr.bf16.mxu0 %v6401_v11  ;;  %v6459_v56 = vld [vmem:[#allocation6 + $0x5c0] ss:$48 sps:$4 sm:$0xff]  }
  0xd6   :  { %2071 = vmatprep.subr.bf16.mxu1 %v6326_v57  ;;  %v6467_v57 = vld [vmem:[#allocation6 + $0x624] ss:$48 sps:$4 sm:$0xff]   ;;  %v6483_v11 = vld [vmem:[#allocation6 + $0x740] ss:$48 sps:$4 sm:$0xff]  }
  0xd8   :  { %2386 = vmatpush1.bf16.msra.mxu0 %v6399_v14  ;;  %v6489_v14 = vld [vmem:[#allocation6 + $0x7a0] ss:$48 sps:$4 sm:$0xff]  }
  0xd9   :  { %2072 = vmatpush1.bf16.msra.mxu1 %v6324_v62  ;;  %2387 = vmatprep.subr.bf16.mxu0 %v6407_v15  ;;  %v6465_v62 = vld [vmem:[#allocation6 + $0x620] ss:$48 sps:$4 sm:$0xff]   ;;  %v6438_v15 = vld [vmem:[#allocation6 + $0xd8] ss:$48 sps:$4 sm:$0xff]  }
  0xda   :  { %2073 = vmatprep.subr.bf16.mxu1 %v6332_v63  ;;  %v6473_v63 = vld [vmem:[#allocation6 + $0x684] ss:$48 sps:$4 sm:$0xff]  }
  0xdc   :  { %2388 = vmatpush1.bf16.msra.mxu0 %v6405_v17  ;;  %v6503_v17 = vld [vmem:[#allocation6 + $0x864] ss:$48 sps:$4 sm:$0xff]  }
  0xdd   :  { %2074 = vmatpush1.bf16.msra.mxu1 %v6330_v2  ;;  %2389 = vmatprep.subr.bf16.mxu0 %v6413_v19  ;;  %v6471_v2 = vld [vmem:[#allocation6 + $0x680] ss:$48 sps:$4 sm:$0xff]   ;;  %v6444_v19 = vld [vmem:[#allocation6 + $0x138] ss:$48 sps:$4 sm:$0xff]  }
  0xde   :  { %2075 = vmatprep.subr.bf16.mxu1 %v6338_v4  ;;  %v6479_v4 = vld [vmem:[#allocation6 + $0x6e4] ss:$48 sps:$4 sm:$0xff]  }
  0xe0   :  { %2390 = vmatpush1.bf16.msra.mxu0 %v6411_v22  ;;  %v6509_v22 = vld [vmem:[#allocation6 + $0x8c4] ss:$48 sps:$4 sm:$0xff]  }
  0xe1   :  { %2076 = vmatpush1.bf16.msra.mxu1 %v6336_v7  ;;  %2391 = vmatprep.subr.bf16.mxu0 %v6419_v23  ;;  %v6477_v7 = vld [vmem:[#allocation6 + $0x6e0] ss:$48 sps:$4 sm:$0xff]  }
  0xe2   :  { %2077 = vmatprep.subr.bf16.mxu1 %v6344_v8  ;;  %v6485_v8 = vld [vmem:[#allocation6 + $0x744] ss:$48 sps:$4 sm:$0xff]  }
  0xe3   :  { %v7287_v23 = vld [vmem:[#allocation3 + $0x4] ss:$12 sps:$4 sm:$0xff]  }
  0xe4   :  { %2392 = vmatpush1.bf16.msra.mxu0 %v6417_v26  ;;  %v6507_v26 = vld [vmem:[#allocation6 + $0x8c0] ss:$48 sps:$4 sm:$0xff]  }
  0xe5   :  { %2078 = vmatpush1.bf16.msra.mxu1 %v6342_v12  ;;  %2393 = vmatprep.subr.bf16.mxu0 %v6425_v27  ;;  %v6491_v12 = vld [vmem:[#allocation6 + $0x7a4] ss:$48 sps:$4 sm:$0xff]   ;;  %v6518_v27 = vld [vmem:[#allocation9 + $0x4] ss:$12 sps:$4 sm:$0xff]  }
  0xe6   :  { %2079 = vmatprep.subr.bf16.mxu1 %v6350_v13  ;;  %v6440_v13 = vld [vmem:[#allocation6 + $0xdc] ss:$48 sps:$4 sm:$0xff]  }
  0xe8   :  { %2394 = vmatpush1.bf16.msra.mxu0 %v6423_v31  ;;  %v6516_v31 = vld [vmem:[#allocation9] ss:$12 sps:$4 sm:$0xff]  }
  0xe9   :  { %2080 = vmatpush1.bf16.msra.mxu1 %v6348_v16  ;;  %2395 = vmatprep.subr.bf16.mxu0 %v6431_v32  ;;  %v6446_v16 = vld [vmem:[#allocation6 + $0x13c] ss:$48 sps:$4 sm:$0xff]   ;;  %v6524_v32 = vld [vmem:[#allocation9 + $0x1c] ss:$12 sps:$4 sm:$0xff]  }
  0xea   :  { %2081 = vmatprep.subr.bf16.mxu1 %v6356_v18  ;;  %v6495_v18 = vld [vmem:[#allocation6 + $0x800] ss:$48 sps:$4 sm:$0xff]  }
  0xec   :  { %2396 = vmatpush1.bf16.msra.mxu0 %v6429_v35  ;;  %v6522_v35 = vld [vmem:[#allocation9 + $0x18] ss:$12 sps:$4 sm:$0xff]  }
  0xed   :  { %2082 = vmatpush1.bf16.msra.mxu1 %v6354_v20  ;;  %2397 = vmatprep.subr.bf16.mxu0 %v6437_v36  ;;  %v6452_v20 = vld [vmem:[#allocation6 + $0x19c] ss:$48 sps:$4 sm:$0xff]  }
  0xee   :  { %2083 = vmatprep.subr.bf16.mxu1 %v6362_v21  ;;  %v6501_v21 = vld [vmem:[#allocation6 + $0x860] ss:$48 sps:$4 sm:$0xff]  }
  0xef   :  { %v6530_v36 = vld [vmem:[#allocation9 + $0x34] ss:$12 sps:$4 sm:$0xff]  }
  0xf0   :  { %2398 = vmatpush1.bf16.msra.mxu0 %v6435_v40  ;;  %v6528_v40 = vld [vmem:[#allocation9 + $0x30] ss:$12 sps:$4 sm:$0xff]  }
  0xf1   :  { %2084 = vmatpush1.bf16.msra.mxu1 %v6360_v24  ;;  %2399 = vmatprep.subr.bf16.mxu0 %v6443_v41  ;;  %v6450_v24 = vld [vmem:[#allocation6 + $0x198] ss:$48 sps:$4 sm:$0xff]  }
  0xf2   :  { %2085 = vmatprep.subr.bf16.mxu1 %v6368_v25  ;;  %v6458_v25 = vld [vmem:[#allocation6 + $0x1fc] ss:$48 sps:$4 sm:$0xff]   ;;  %v6536_v41 = vld [vmem:[#allocation9 + $0x4c] ss:$12 sps:$4 sm:$0xff]  }
  0xf4   :  { %2400 = vmatpush1.bf16.msra.mxu0 %v6441_v44  ;;  %v6534_v44 = vld [vmem:[#allocation9 + $0x48] ss:$12 sps:$4 sm:$0xff]  }
  0xf5   :  { %2086 = vmatpush1.bf16.msra.mxu1 %v6366_v28  ;;  %2401 = vmatprep.subr.bf16.mxu0 %v6449_v45  ;;  %v6456_v28 = vld [vmem:[#allocation6 + $0x1f8] ss:$48 sps:$4 sm:$0xff]  }
  0xf6   :  { %2087 = vmatprep.subr.bf16.mxu1 %v6374_v29  ;;  %v6464_v29 = vld [vmem:[#allocation6 + $0x25c] ss:$48 sps:$4 sm:$0xff]   ;;  %v6480_v45 = vld [vmem:[#allocation6 + $0x378] ss:$48 sps:$4 sm:$0xff]  }
  0xf8   :  { %2402 = vmatpush1.bf16.msra.mxu0 %v6447_v48  ;;  %v6548_v48 = vld [vmem:[#allocation9 + $0x7c] ss:$12 sps:$4 sm:$0xff]  }
  0xf9   :  { %2088 = vmatpush1.bf16.msra.mxu1 %v6372_v33  ;;  %2403 = vmatprep.subr.bf16.mxu0 %v6455_v49  ;;  %v6462_v33 = vld [vmem:[#allocation6 + $0x258] ss:$48 sps:$4 sm:$0xff]  }
  0xfa   :  { %2110 = vmatprep.subr.bf16.mxu1 %v6380_v34  ;;  %v6470_v34 = vld [vmem:[#allocation6 + $0x2bc] ss:$48 sps:$4 sm:$0xff]   ;;  %v6486_v49 = vld [vmem:[#allocation6 + $0x3d8] ss:$48 sps:$4 sm:$0xff]  }
  0xfc   :  { %2090 = vmatmul.mubr.bf16.vlgmr.msra.gmra.mrb[8].mxu1 %v7250_v58  ;;  %2404 = vmatpush1.bf16.msra.mxu0 %v6453_v52  ;;  %v6492_v52 = vld [vmem:[#allocation6 + $0x438] ss:$48 sps:$4 sm:$0xff]  }
  0xfd   :  { %2111 = vmatpush1.bf16.msra.mxu1 %v6378_v37  ;;  %2099 = vmatprep.mubr.bf16.mxu1 %v7252_v59  ;;  %v6468_v37 = vld [vmem:[#allocation6 + $0x2b8] ss:$48 sps:$4 sm:$0xff]  }
  0xfe   :  { %2112 = vmatprep.subr.bf16.mxu1 %v6386_v38  ;;  %2405 = vmatprep.subr.bf16.mxu0 %v6461_v53  ;;  %v6476_v38 = vld [vmem:[#allocation6 + $0x31c] ss:$48 sps:$4 sm:$0xff]  }
  0xff   :  { %v6500_v53 = vld [vmem:[#allocation6 + $0x49c] ss:$48 sps:$4 sm:$0xff]  }
 0x100   :  { %2406 = vmatpush1.bf16.msra.mxu0 %v6459_v56  ;;  %v6498_v56 = vld [vmem:[#allocation6 + $0x498] ss:$48 sps:$4 sm:$0xff]  }
 0x101   :  { %2113 = vmatpush1.bf16.msra.mxu1 %v6384_v42  ;;  %2428 = vmatprep.subr.bf16.mxu0 %v6467_v57  ;;  %v6474_v42 = vld [vmem:[#allocation6 + $0x318] ss:$48 sps:$4 sm:$0xff]   ;;  %v6506_v57 = vld [vmem:[#allocation6 + $0x4fc] ss:$48 sps:$4 sm:$0xff]  }
 0x102   :  { %2114 = vmatprep.subr.bf16.mxu1 %v6392_v43  ;;  %v6482_v43 = vld [vmem:[#allocation6 + $0x37c] ss:$48 sps:$4 sm:$0xff]  }
 0x103   :  { %2408 = vmatmul.mubr.bf16.vlgmr.msra.gmra.mrb[8].mxu0 %v7250_v58  ;;  %v6434_v58 = vld [vmem:[#allocation6 + $0x7c] ss:$48 sps:$4 sm:$0xff]  }
 0x104   :  { %2100 = vmatmul.mubr.bf16.gmra.mrb[12].mxu1 %v7256_v3  ;;  %2429 = vmatpush1.bf16.msra.mxu0 %v6465_v62  ;;  %v6504_v62 = vld [vmem:[#allocation6 + $0x4f8] ss:$48 sps:$4 sm:$0xff]  }
 0x105   :  { %2115 = vmatpush1.bf16.msra.mxu1 %v6390_v46  ;;  %2142 = vmatprep.mubr.bf16.mxu1 %v7152_v9  ;;  %v6488_v46 = vld [vmem:[#allocation6 + $0x3dc] ss:$48 sps:$4 sm:$0xff]  }
 0x106   :  { %2116 = vmatprep.subr.bf16.mxu1 %v6398_v47  ;;  %2430 = vmatprep.subr.bf16.mxu0 %v6473_v63  ;;  %v6540_v47 = vld [vmem:[#allocation9 + $0x60] ss:$12 sps:$4 sm:$0xff]  }
 0x107   :  { %2417 = vmatprep.mubr.bf16.mxu0 %v7252_v59  ;;  %v6432_v59 = vld [vmem:[#allocation6 + $0x78] ss:$48 sps:$4 sm:$0xff]   ;;  %v6512_v63 = vld [vmem:[#allocation6 + $0x55c] ss:$48 sps:$4 sm:$0xff]  }
 0x108   :  { %2431 = vmatpush1.bf16.msra.mxu0 %v6471_v2  ;;  %v6510_v2 = vld [vmem:[#allocation6 + $0x558] ss:$48 sps:$4 sm:$0xff]  }
 0x109   :  { %2117 = vmatpush1.bf16.msra.mxu1 %v6396_v50  ;;  %2432 = vmatprep.subr.bf16.mxu0 %v6479_v4  ;;  %v6494_v50 = vld [vmem:[#allocation6 + $0x43c] ss:$48 sps:$4 sm:$0xff]  }
 0x10a   :  { %2118 = vmatprep.subr.bf16.mxu1 %v6404_v51  ;;  %v6546_v51 = vld [vmem:[#allocation9 + $0x78] ss:$12 sps:$4 sm:$0xff]   ;;  %v6515_v4 = vld [vmem:[#allocation6 + $0x5bc] ss:$48 sps:$4 sm:$0xff]  }
 0x10b   :  { %2418 = vmatmul.mubr.bf16.gmra.mrb[12].mxu0 %v7256_v3  ;;  %v6497_v3 = vld [vmem:[#allocation6 + $0x804] ss:$48 sps:$4 sm:$0xff]  }
 0x10c   :  { %2433 = vmatpush1.bf16.msra.mxu0 %v6477_v7  ;;  %2460 = vmatprep.mubr.bf16.mxu0 %v7152_v9  ;;  %v6513_v7 = vld [vmem:[#allocation6 + $0x5b8] ss:$48 sps:$4 sm:$0xff]  }
 0x10d   :  { %2119 = vmatpush1.bf16.msra.mxu1 %v6402_v54  ;;  %2434 = vmatprep.subr.bf16.mxu0 %v6485_v8  ;;  %v6552_v54 = vld [vmem:[#allocation9 + $0x90] ss:$12 sps:$4 sm:$0xff]  }
 0x10e   :  { %2120 = vmatprep.subr.bf16.mxu1 %v6410_v55  ;;  %v6560_v55 = vld [vmem:[#allocation9 + $0xac] ss:$12 sps:$4 sm:$0xff]   ;;  %v6521_v8 = vld [vmem:[#allocation6 + $0x61c] ss:$48 sps:$4 sm:$0xff]  }
 0x110   :  { %2435 = vmatpush1.bf16.msra.mxu0 %v6483_v11  ;;  %v6584_v11 = vld [vmem:[#allocation9 + $0x10c] ss:$12 sps:$4 sm:$0xff]  }
 0x111   :  { %2121 = vmatpush1.bf16.msra.mxu1 %v6408_v60  ;;  %2436 = vmatprep.subr.bf16.mxu0 %v6491_v12  ;;  %v6558_v60 = vld [vmem:[#allocation9 + $0xa8] ss:$12 sps:$4 sm:$0xff]   ;;  %v6527_v12 = vld [vmem:[#allocation6 + $0x67c] ss:$48 sps:$4 sm:$0xff]  }
 0x112   :  { %2122 = vmatprep.subr.bf16.mxu1 %v6416_v61  ;;  %v6566_v61 = vld [vmem:[#allocation9 + $0xc4] ss:$12 sps:$4 sm:$0xff]  }
 0x114   :  { %2437 = vmatpush1.bf16.msra.mxu0 %v6489_v14  ;;  %v7293_v14 = vld [vmem:[#allocation3] ss:$12 sps:$4 sm:$0xff]  }
 0x115   :  { %2123 = vmatpush1.bf16.msra.mxu1 %v6414_v0  ;;  %2438 = vmatprep.subr.bf16.mxu0 %v6497_v3  ;;  %v6564_v0 = vld [vmem:[#allocation9 + $0xc0] ss:$12 sps:$4 sm:$0xff]  }
 0x116   :  { %2124 = vmatprep.subr.bf16.mxu1 %v6422_v1  ;;  %v6572_v1 = vld [vmem:[#allocation9 + $0xdc] ss:$12 sps:$4 sm:$0xff]  }
 0x117   :  { %v6525_v3 = vld [vmem:[#allocation6 + $0x678] ss:$48 sps:$4 sm:$0xff]  }
 0x118   :  { %2439 = vmatpush1.bf16.msra.mxu0 %v6495_v18  ;;  %v6588_v18 = vld [vmem:[#allocation9 + $0x120] ss:$12 sps:$4 sm:$0xff]  }
 0x119   :  { %2125 = vmatpush1.bf16.msra.mxu1 %v6420_v5  ;;  %2440 = vmatprep.subr.bf16.mxu0 %v6503_v17  ;;  %v6570_v5 = vld [vmem:[#allocation9 + $0xd8] ss:$12 sps:$4 sm:$0xff]   ;;  %v6596_v17 = vld [vmem:[#allocation9 + $0x13c] ss:$12 sps:$4 sm:$0xff]  }
 0x11a   :  { %2269 = vmatprep.subr.bf16.mxu1 %v6428_v6  ;;  %v6578_v6 = vld [vmem:[#allocation9 + $0xf4] ss:$12 sps:$4 sm:$0xff]  }
 0x11c   :  { %2143 = vmatmul.mubr.bf16.vlgmr.msra.gmra.mrb[8].mxu1 %v7262_v30  ;;  %2441 = vmatpush1.bf16.msra.mxu0 %v6501_v21  ;;  %v6594_v21 = vld [vmem:[#allocation9 + $0x138] ss:$12 sps:$4 sm:$0xff]  }
 0x11d   :  { %2270 = vmatpush1.bf16.msra.mxu1 %v6426_v10  ;;  %2152 = vmatprep.mubr.bf16.mxu1 %v7152_v9  ;;  %v6576_v10 = vld [vmem:[#allocation9 + $0xf0] ss:$12 sps:$4 sm:$0xff]  }
 0x11e   :  { %2271 = vmatprep.subr.bf16.mxu1 %v6434_v58  ;;  %2442 = vmatprep.subr.bf16.mxu0 %v6509_v22  ;;  %v6519_v58 = vld [vmem:[#allocation6 + $0x618] ss:$48 sps:$4 sm:$0xff]   ;;  %v6602_v22 = vld [vmem:[#allocation9 + $0x154] ss:$12 sps:$4 sm:$0xff]  }
 0x120   :  { %2443 = vmatpush1.bf16.msra.mxu0 %v6507_v26  ;;  %v6545_v26 = vld [vmem:[#allocation6 + $0x79c] ss:$48 sps:$4 sm:$0xff]  }
 0x121   :  { %2272 = vmatpush1.bf16.msra.mxu1 %v6432_v59  ;;  %4591 = vmatprep.subr.bf16.mxu0 %v6518_v27  ;;  %v6582_v59 = vld [vmem:[#allocation9 + $0x108] ss:$12 sps:$4 sm:$0xff]   ;;  %v6600_v27 = vld [vmem:[#allocation9 + $0x150] ss:$12 sps:$4 sm:$0xff]  }
 0x122   :  { %2273 = vmatprep.subr.bf16.mxu1 %v6440_v13  ;;  %v6590_v13 = vld [vmem:[#allocation9 + $0x124] ss:$12 sps:$4 sm:$0xff]  }
 0x123   :  { %2461 = vmatmul.mubr.bf16.vlgmr.msra.gmra.mrb[8].mxu0 %v7262_v30  ;;  %v6542_v30 = vld [vmem:[#allocation9 + $0x64] ss:$12 sps:$4 sm:$0xff]  }
 0x124   :  { %2153 = vmatmul.mubr.bf16.gmra.mrb[12].mxu1 %v7268_v39  ;;  %4592 = vmatpush1.bf16.msra.mxu0 %v6516_v31  ;;  %v6551_v31 = vld [vmem:[#allocation6 + $0x7fc] ss:$48 sps:$4 sm:$0xff]  }
 0x125   :  { %2274 = vmatpush1.bf16.msra.mxu1 %v6438_v15  ;;  %2301 = vmatprep.mubr.bf16.mxu1 %v7287_v23  ;;  %v7296_v15 = vld [vmem:[#allocation3 + $0x1c] ss:$12 sps:$4 sm:$0xff]  }
 0x126   :  { %2275 = vmatprep.subr.bf16.mxu1 %v6446_v16  ;;  %4593 = vmatprep.subr.bf16.mxu0 %v6524_v32  ;;  %v6533_v16 = vld [vmem:[#allocation6 + $0x6dc] ss:$48 sps:$4 sm:$0xff]   ;;  %v6606_v32 = vld [vmem:[#allocation9 + $0x168] ss:$12 sps:$4 sm:$0xff]  }
 0x127   :  { %2470 = vmatprep.mubr.bf16.mxu0 %v7152_v9 }
 0x128   :  { %4594 = vmatpush1.bf16.msra.mxu0 %v6522_v35  ;;  %v6557_v35 = vld [vmem:[#allocation6 + $0x85c] ss:$48 sps:$4 sm:$0xff]  }
 0x129   :  { %2276 = vmatpush1.bf16.msra.mxu1 %v6444_v19  ;;  %4595 = vmatprep.subr.bf16.mxu0 %v6530_v36  ;;  %v6531_v19 = vld [vmem:[#allocation6 + $0x6d8] ss:$48 sps:$4 sm:$0xff]  }
 0x12a   :  { %2277 = vmatprep.subr.bf16.mxu1 %v6452_v20  ;;  %v6539_v20 = vld [vmem:[#allocation6 + $0x73c] ss:$48 sps:$4 sm:$0xff]   ;;  %v6555_v36 = vld [vmem:[#allocation6 + $0x858] ss:$48 sps:$4 sm:$0xff]  }
 0x12b   :  { %2471 = vmatmul.mubr.bf16.gmra.mrb[12].mxu0 %v7268_v39  ;;  %v6554_v39 = vld [vmem:[#allocation9 + $0x94] ss:$12 sps:$4 sm:$0xff]  }
 0x12c   :  { %4596 = vmatpush1.bf16.msra.mxu0 %v6528_v40  ;;  %v6569_v40 = vld [vmem:[#allocation6 + $0x2c] ss:$48 sps:$4 sm:$0xff]  }
 0x12d   :  { %2278 = vmatpush1.bf16.msra.mxu1 %v6450_v24  ;;  %4597 = vmatprep.subr.bf16.mxu0 %v6536_v41  ;;  %v7299_v24 = vld [vmem:[#allocation3 + $0x18] ss:$12 sps:$4 sm:$0xff]  }
 0x12e   :  { %2279 = vmatprep.subr.bf16.mxu1 %v6458_v25  ;;  %v6537_v25 = vld [vmem:[#allocation6 + $0x738] ss:$48 sps:$4 sm:$0xff]  }
 0x12f   :  { %v6567_v41 = vld [vmem:[#allocation6 + $0x28] ss:$48 sps:$4 sm:$0xff]  }
 0x130   :  { %4598 = vmatpush1.bf16.msra.mxu0 %v6534_v44  ;;  %v6573_v44 = vld [vmem:[#allocation6 + $0x88] ss:$48 sps:$4 sm:$0xff]  }
 0x131   :  { %2280 = vmatpush1.bf16.msra.mxu1 %v6456_v28  ;;  %4599 = vmatprep.subr.bf16.mxu0 %v6542_v30  ;;  %v6608_v28 = vld [vmem:[#allocation9 + $0x16c] ss:$12 sps:$4 sm:$0xff]   ;;  %v6581_v30 = vld [vmem:[#allocation6 + $0xec] ss:$48 sps:$4 sm:$0xff]  }
 0x132   :  { %2281 = vmatprep.subr.bf16.mxu1 %v6464_v29  ;;  %v6543_v29 = vld [vmem:[#allocation6 + $0x798] ss:$48 sps:$4 sm:$0xff]  }
 0x134   :  { %4600 = vmatpush1.bf16.msra.mxu0 %v6540_v47  ;;  %v6587_v47 = vld [vmem:[#allocation6 + $0x14c] ss:$48 sps:$4 sm:$0xff]  }
 0x135   :  { %2282 = vmatpush1.bf16.msra.mxu1 %v6462_v33  ;;  %4601 = vmatprep.subr.bf16.mxu0 %v6548_v48  ;;  %v6638_v33 = vld [vmem:[#allocation9 + $0x184] ss:$12 sps:$4 sm:$0xff]  }
 0x136   :  { %2283 = vmatprep.subr.bf16.mxu1 %v6470_v34  ;;  %v6549_v34 = vld [vmem:[#allocation6 + $0x7f8] ss:$48 sps:$4 sm:$0xff]  }
 0x138   :  { %4602 = vmatpush1.bf16.msra.mxu0 %v6546_v51  ;;  %v6593_v51 = vld [vmem:[#allocation6 + $0x1ac] ss:$48 sps:$4 sm:$0xff]  }
 0x139   :  { %2284 = vmatpush1.bf16.msra.mxu1 %v6468_v37  ;;  %4603 = vmatprep.subr.bf16.mxu0 %v6554_v39  ;;  %v6563_v37 = vld [vmem:[#allocation6 + $0x8bc] ss:$48 sps:$4 sm:$0xff]   ;;  %v6591_v39 = vld [vmem:[#allocation6 + $0x1a8] ss:$48 sps:$4 sm:$0xff]  }
 0x13a   :  { %2285 = vmatprep.subr.bf16.mxu1 %v6476_v38  ;;  %v6561_v38 = vld [vmem:[#allocation6 + $0x8b8] ss:$48 sps:$4 sm:$0xff]  }
 0x13c   :  { %4604 = vmatpush1.bf16.msra.mxu0 %v6552_v54  ;;  %v6599_v54 = vld [vmem:[#allocation6 + $0x20c] ss:$48 sps:$4 sm:$0xff]  }
 0x13d   :  { %2286 = vmatpush1.bf16.msra.mxu1 %v6474_v42  ;;  %4605 = vmatprep.subr.bf16.mxu0 %v6560_v55  ;;  %v6575_v42 = vld [vmem:[#allocation6 + $0x8c] ss:$48 sps:$4 sm:$0xff]  }
 0x13e   :  { %2287 = vmatprep.subr.bf16.mxu1 %v6482_v43  ;;  %v7303_v43 = vld [vmem:[#allocation3 + $0x8] ss:$12 sps:$4 sm:$0xff]  }
 0x140   :  { %4606 = vmatpush1.bf16.msra.mxu0 %v6558_v60  ;;  %v6605_v60 = vld [vmem:[#allocation6 + $0x26c] ss:$48 sps:$4 sm:$0xff]  }
 0x141   :  { %2288 = vmatpush1.bf16.msra.mxu1 %v6480_v45  ;;  %4607 = vmatprep.subr.bf16.mxu0 %v6566_v61  ;;  %v92_v45 = vlaneseq }
 0x142   :  { %2289 = vmatprep.subr.bf16.mxu1 %v6488_v46  ;;  %v6579_v46 = vld [vmem:[#allocation6 + $0xe8] ss:$48 sps:$4 sm:$0xff]  }
 0x143   :  { %v7307_v48 = vshrl.u32 %v92_v45, 7  ;;  %v6648_v45 = vld [vmem:[#allocation9 + $0x1b0] ss:$12 sps:$4 sm:$0xff]  }
 0x144   :  { %4608 = vmatpush1.bf16.msra.mxu0 %v6564_v0  ;;  %v6603_v0 = vld [vmem:[#allocation6 + $0x268] ss:$48 sps:$4 sm:$0xff]  }
 0x145   :  { %2290 = vmatpush1.bf16.msra.mxu1 %v6486_v49  ;;  %4609 = vmatprep.subr.bf16.mxu0 %v6572_v1  ;;  %v7309_v49 = vld [vmem:[#allocation3 + $0x20] ss:$12 sps:$4 sm:$0xff]   ;;  %v7319_v55 = vsub.s32 1, %v7307_v48 }
 0x146   :  { %2291 = vmatprep.subr.bf16.mxu1 %v6494_v50  ;;  %v6585_v50 = vld [vmem:[#allocation6 + $0x148] ss:$48 sps:$4 sm:$0xff]   ;;  %v6611_v1 = vld [vmem:[#allocation6 + $0x2cc] ss:$48 sps:$4 sm:$0xff]  }
 0x148   :  { %4610 = vmatpush1.bf16.msra.mxu0 %v6570_v5 }
 0x149   :  { %2292 = vmatpush1.bf16.msra.mxu1 %v6492_v52  ;;  %4611 = vmatprep.subr.bf16.mxu0 %v6578_v6  ;;  %v7314_v52 = vsub.s32 0, %v7307_v48 }
 0x14a   :  { %2293 = vmatprep.subr.bf16.mxu1 %v6500_v53  ;;  %v7316_v53 = vld [vmem:[#allocation8] sm:$0xff] }
 0x14c   :  { %4612 = vmatpush1.bf16.msra.mxu0 %v6576_v10 }
 0x14d   :  { %2294 = vmatpush1.bf16.msra.mxu1 %v6498_v56  ;;  %4613 = vmatprep.subr.bf16.mxu0 %v6584_v11  ;;  %v6597_v56 = vld [vmem:[#allocation6 + $0x208] ss:$48 sps:$4 sm:$0xff]  }
 0x14e   :  { %2295 = vmatprep.subr.bf16.mxu1 %v6506_v57  ;;  %v422_v57 = vrot.slane %v7316_v53, %v7314_v52 }
 0x150   :  { %4614 = vmatpush1.bf16.msra.mxu0 %v6582_v59 }
 0x151   :  { %2296 = vmatpush1.bf16.msra.mxu1 %v6504_v62  ;;  %4615 = vmatprep.subr.bf16.mxu0 %v6590_v13 }
 0x152   :  { %2297 = vmatprep.subr.bf16.mxu1 %v6512_v63 }
 0x154   :  { %4616 = vmatpush1.bf16.msra.mxu0 %v6588_v18  ;;  %v6612_v18 = vld [vmem:[#allocation6 + $0x328] ss:$48 sps:$4 sm:$0xff]  }
 0x155   :  { %2298 = vmatpush1.bf16.msra.mxu1 %v6510_v2  ;;  %4617 = vmatprep.subr.bf16.mxu0 %v6596_v17  ;;  %v6636_v17 = vld [vmem:[#allocation9 + $0x180] ss:$12 sps:$4 sm:$0xff]  }
 0x156   :  { %2299 = vmatprep.subr.bf16.mxu1 %v6515_v4 }
 0x158   :  { %4618 = vmatpush1.bf16.msra.mxu0 %v6594_v21  ;;  %v6617_v21 = vld [vmem:[#allocation6 + $0x38c] ss:$48 sps:$4 sm:$0xff]  }
 0x159   :  { %2300 = vmatpush1.bf16.msra.mxu1 %v6513_v7  ;;  %4619 = vmatprep.subr.bf16.mxu0 %v6602_v22  ;;  %v6644_v22 = vld [vmem:[#allocation9 + $0x19c] ss:$12 sps:$4 sm:$0xff]  }
 0x15a   :  { %2322 = vmatprep.subr.bf16.mxu1 %v6521_v8  ;;  %v6609_v8 = vld [vmem:[#allocation6 + $0x2c8] ss:$48 sps:$4 sm:$0xff]  }
 0x15c   :  { %2302 = vmatmul.mubr.bf16.vlgmr.msra.gmra.mrb[16].mxu1 %v7293_v14  ;;  %4620 = vmatpush1.bf16.msra.mxu0 %v6600_v27 }
 0x15d   :  { %2323 = vmatpush1.bf16.msra.mxu1 %v6519_v58  ;;  %2311 = vmatprep.mubr.bf16.mxu1 %v7296_v15 }
 0x15e   :  { %2324 = vmatprep.subr.bf16.mxu1 %v6527_v12  ;;  %4621 = vmatprep.subr.bf16.mxu0 %v6608_v28  ;;  %v6614_v12 = vld [vmem:[#allocation6 + $0x32c] ss:$48 sps:$4 sm:$0xff]  }
 0x160   :  { %4622 = vmatpush1.bf16.msra.mxu0 %v6606_v32  ;;  %v6642_v32 = vld [vmem:[#allocation9 + $0x198] ss:$12 sps:$4 sm:$0xff]  }
 0x161   :  { %2325 = vmatpush1.bf16.msra.mxu1 %v6525_v3  ;;  %4644 = vmatprep.subr.bf16.mxu0 %v6638_v33 }
 0x162   :  { %2326 = vmatprep.subr.bf16.mxu1 %v6533_v16 }
 0x164   :  { %2312 = vmatmul.mubr.bf16.gmra.mrb[20].mxu1 %v7299_v24 }
 0x165   :  { %2327 = vmatpush1.bf16.msra.mxu1 %v6531_v19  ;;  %2354 = vmatprep.mubr.bf16.mxu1 %v7152_v9 }
 0x166   :  { %2328 = vmatprep.subr.bf16.mxu1 %v6539_v20 }
 0x169   :  { %2329 = vmatpush1.bf16.msra.mxu1 %v6537_v25 }
 0x16a   :  { %2330 = vmatprep.subr.bf16.mxu1 %v6545_v26 }
 0x16d   :  { %2331 = vmatpush1.bf16.msra.mxu1 %v6543_v29 }
 0x16e   :  { %2332 = vmatprep.subr.bf16.mxu1 %v6551_v31  ;;  %v6615_v31 = vld [vmem:[#allocation6 + $0x388] ss:$48 sps:$4 sm:$0xff]  }
 0x171   :  { %2333 = vmatpush1.bf16.msra.mxu1 %v6549_v34 }
 0x172   :  { %2334 = vmatprep.subr.bf16.mxu1 %v6557_v35  ;;  %v6620_v35 = vld [vmem:[#allocation6 + $0x3ec] ss:$48 sps:$4 sm:$0xff]  }
 0x175   :  { %2335 = vmatpush1.bf16.msra.mxu1 %v6555_v36  ;;  %v6650_v36 = vld [vmem:[#allocation9 + $0x1b4] ss:$12 sps:$4 sm:$0xff]  }
 0x176   :  { %2336 = vmatprep.subr.bf16.mxu1 %v6563_v37  ;;  %v437_v37 = vsub.s32 4, %v7307_v48 }
 0x179   :  { %2337 = vmatpush1.bf16.msra.mxu1 %v6561_v38 }
 0x17a   :  { %2481 = vmatprep.subr.bf16.mxu1 %v6569_v40 }
 0x17c   :  { %2355 = vmatmul.mubr.bf16.vlgmr.msra.gmra.mrb[16].mxu1 %v7303_v43 }
 0x17d   :  { %2482 = vmatpush1.bf16.msra.mxu1 %v6567_v41  ;;  %2364 = vmatprep.mubr.bf16.mxu1 %v7152_v9  ;;  %v441_v41 = vsub.s32 5, %v7307_v48 }
 0x17e   :  { %2483 = vmatprep.subr.bf16.mxu1 %v6575_v42 }
 0x181   :  { %2484 = vmatpush1.bf16.msra.mxu1 %v6573_v44 }
 0x182   :  { %2485 = vmatprep.subr.bf16.mxu1 %v6581_v30  ;;  %v6618_v30 = vld [vmem:[#allocation6 + $0x3e8] ss:$48 sps:$4 sm:$0xff]  }
 0x184   :  { %2365 = vmatmul.mubr.bf16.gmra.mrb[20].mxu1 %v7309_v49 }
 0x185   :  { %2486 = vmatpush1.bf16.msra.mxu1 %v6579_v46  ;;  %2513 = vmatprep.mubr.bf16.mxu1 %v7287_v23  ;;  %v426_v23 = vrot.slane %v7316_v53, %v7319_v55  ;;  %v6623_v46 = vld [vmem:[#allocation6 + $0x44c] ss:$48 sps:$4 sm:$0xff]  }
 0x186   :  { %2487 = vmatprep.subr.bf16.mxu1 %v6587_v47  ;;  %v6656_v47 = vld [vmem:[#allocation9 + $0x1cc] ss:$12 sps:$4 sm:$0xff]  }
 0x189   :  { %2488 = vmatpush1.bf16.msra.mxu1 %v6585_v50  ;;  %v438_v50 = vrot.slane %v7316_v53, %v437_v37 }
 0x18a   :  { %2489 = vmatprep.subr.bf16.mxu1 %v6593_v51  ;;  %v442_v51 = vrot.slane %v7316_v53, %v441_v41  ;;  %v6678_v41 = vld [vmem:[#allocation9 + $0x228] ss:$12 sps:$4 sm:$0xff]  }
 0x18d   :  { %2490 = vmatpush1.bf16.msra.mxu1 %v6591_v39  ;;  %v6654_v39 = vld [vmem:[#allocation9 + $0x1c8] ss:$12 sps:$4 sm:$0xff]  }
 0x18e   :  { %2491 = vmatprep.subr.bf16.mxu1 %v6599_v54  ;;  %v6621_v54 = vld [vmem:[#allocation6 + $0x448] ss:$48 sps:$4 sm:$0xff]  }
 0x18f   :  { %v2038_v61 = vpop.f32.mrb[0].mxu1 }
 0x190   :  { %v6023_v62 = vadd.f32 %v2038_v61, %v422_v57  ;;  %v2040_v63 = vpop.f32.mrb[1].mxu1 }
 0x191   :  { %v6024_v2 = vadd.f32 %v2040_v63, %v426_v23  ;;  %v2042_v4 = vpop.f32.mrb[2].mxu1  ;;  %2492 = vmatpush1.bf16.msra.mxu1 %v6597_v56  ;;  %v6662_v56 = vld [vmem:[#allocation9 + $0x1e4] ss:$12 sps:$4 sm:$0xff]  }
 0x192   :  { %v6025_v5 = vadd.f32 %v2042_v4, %v422_v57  ;;  %v2044_v6 = vpop.f32.mrb[3].mxu1  ;;  %2493 = vmatprep.subr.bf16.mxu1 %v6605_v60  ;;  %v2587_v10 = vmax.f32 %v6023_v62, 0.0  ;;  %v6626_v60 = vld [vmem:[#allocation6 + $0x4ac] ss:$48 sps:$4 sm:$0xff]  }
 0x193   :  { %v6026_v7 = vadd.f32 %v2044_v6, %v426_v23  ;;  %v2588_v58 = vmax.f32 %v6024_v2, 0.0 }
 0x194   :  { %v2599_v11 = vmax.f32 %v6025_v5, 0.0  ;;  %v6624_v5 = vld [vmem:[#allocation6 + $0x4a8] ss:$48 sps:$4 sm:$0xff]  }
 0x195   :  { %v2600_v59 = vmax.f32 %v6026_v7, 0.0  ;;  %2494 = vmatpush1.bf16.msra.mxu1 %v6603_v0  ;;  %v6660_v0 = vld [vmem:[#allocation9 + $0x1e0] ss:$12 sps:$4 sm:$0xff]  }
 0x196   :  { %v7325_v13 = vpack.c.bf16 %v2599_v11, %v2587_v10  ;;  %2495 = vmatprep.subr.bf16.mxu1 %v6611_v1  ;;  %v6629_v10 = vld [vmem:[#allocation6 + $0x50c] ss:$48 sps:$4 sm:$0xff]  }
 0x197   :  { %v7327_v3 = vpack.c.bf16 %v2600_v59, %v2588_v58  ;;  %v2048_v16 = vpop.f32.mrb[4].mxu1 }
 0x198   :  { %v6027_v19 = vadd.f32 %v2048_v16, %v422_v57  ;;  %v2050_v20 = vpop.f32.mrb[5].mxu1  ;;  %v6666_v16 = vld [vmem:[#allocation9 + $0x1f8] ss:$12 sps:$4 sm:$0xff]  }
 0x199   :  { %v6028_v25 = vadd.f32 %v2050_v20, %v426_v23  ;;  %v2052_v26 = vpop.f32.mrb[6].mxu1  ;;  %2496 = vmatpush1.bf16.msra.mxu1 %v6609_v8  ;;  %4623 = vmatprep.mubr.bf16.mxu0 %v7327_v3  ;;  %v6668_v8 = vld [vmem:[#allocation9 + $0x1fc] ss:$12 sps:$4 sm:$0xff]  }
 0x19a   :  { %v6029_v27 = vadd.f32 %v2052_v26, %v422_v57  ;;  %v2054_v28 = vpop.f32.mrb[7].mxu1  ;;  %4624 = vmatmul.mubr.bf16.vlgmr.msra.gmra.mrb[16].mxu0 %v7325_v13  ;;  %2497 = vmatprep.subr.bf16.mxu1 %v6614_v12  ;;  %v2611_v33 = vmax.f32 %v6027_v19, 0.0  ;;  %v2250_v57 = vpop.f32.mrb[0].mxu0  ;;  %v6627_v12 = vld [vmem:[#allocation6 + $0x508] ss:$48 sps:$4 sm:$0xff]  }
 0x19b   :  { %v6030_v29 = vadd.f32 %v2054_v28, %v426_v23  ;;  %4645 = vmatpush1.bf16.msra.mxu0 %v6636_v17  ;;  %v2612_v38 = vmax.f32 %v6028_v25, 0.0  ;;  %v6039_v23 = vadd.f32 %v2250_v57, %v438_v50  ;;  %v2252_v61 = vpop.f32.mrb[1].mxu0  ;;  %v6674_v19 = vld [vmem:[#allocation9 + $0x214] ss:$12 sps:$4 sm:$0xff]   ;;  %v6672_v28 = vld [vmem:[#allocation9 + $0x210] ss:$12 sps:$4 sm:$0xff]  }
 0x19c   :  { %v2623_v34 = vmax.f32 %v6029_v27, 0.0  ;;  %4646 = vmatprep.subr.bf16.mxu0 %v6644_v22  ;;  %v6040_v62 = vadd.f32 %v2252_v61, %v442_v51  ;;  %v2254_v63 = vpop.f32.mrb[2].mxu0  ;;  %v6630_v27 = vld [vmem:[#allocation6 + $0x568] ss:$48 sps:$4 sm:$0xff]  }
 0x19d   :  { %v2624_v40 = vmax.f32 %v6030_v29, 0.0  ;;  %2498 = vmatpush1.bf16.msra.mxu1 %v6612_v18  ;;  %v2591_v1 = vmax.f32 %v6039_v23, 0.0  ;;  %v6041_v2 = vadd.f32 %v2254_v63, %v438_v50  ;;  %v2256_v4 = vpop.f32.mrb[3].mxu0  ;;  %v6632_v18 = vld [vmem:[#allocation6 + $0x56c] ss:$48 sps:$4 sm:$0xff]  }
 0x19e   :  { %v7333_v42 = vpack.c.bf16 %v2623_v34, %v2611_v33  ;;  %2499 = vmatprep.subr.bf16.mxu1 %v6617_v21  ;;  %v2592_v6 = vmax.f32 %v6040_v62, 0.0  ;;  %v6042_v7 = vadd.f32 %v2256_v4, %v442_v51  ;;  %v2260_v20 = vpop.f32.mrb[4].mxu0  ;;  %v6635_v33 = vld [vmem:[#allocation6 + $0x5cc] ss:$48 sps:$4 sm:$0xff]   ;;  %v6680_v34 = vld [vmem:[#allocation9 + $0x22c] ss:$12 sps:$4 sm:$0xff]  }
 0x19f   :  { %v7335_v44 = vpack.c.bf16 %v2624_v40, %v2612_v38  ;;  %4647 = vmatpush1.bf16.msra.mxu0 %v6642_v32  ;;  %v2603_v58 = vmax.f32 %v6041_v2, 0.0  ;;  %v6043_v21 = vadd.f32 %v2260_v20, %v438_v50  ;;  %v2262_v22 = vpop.f32.mrb[5].mxu0  ;;  %v6633_v40 = vld [vmem:[#allocation6 + $0x5c8] ss:$48 sps:$4 sm:$0xff]   ;;  %v6695_v23 = vld [vmem:[#allocation9 + $0x274] ss:$12 sps:$4 sm:$0xff]  }
 0x1a0   :  { %4648 = vmatprep.subr.bf16.mxu0 %v6650_v36  ;;  %v2604_v11 = vmax.f32 %v6042_v7, 0.0  ;;  %v6044_v25 = vadd.f32 %v2262_v22, %v442_v51  ;;  %v2264_v26 = vpop.f32.mrb[6].mxu0  ;;  %v6645_v57 = vld [vmem:[#allocation6 + $0x688] ss:$48 sps:$4 sm:$0xff]   ;;  %v6705_v4 = vld [vmem:[#allocation9 + $0x2a4] ss:$12 sps:$4 sm:$0xff]  }
 0x1a1   :  { %2500 = vmatpush1.bf16.msra.mxu1 %v6615_v31  ;;  %4633 = vmatprep.mubr.bf16.mxu0 %v7335_v44  ;;  %v7341_v59 = vpack.c.bf16 %v2603_v58, %v2591_v1  ;;  %v2615_v29 = vmax.f32 %v6043_v21, 0.0  ;;  %v6045_v31 = vadd.f32 %v2264_v26, %v438_v50  ;;  %v2266_v32 = vpop.f32.mrb[7].mxu0  ;;  %v6684_v50 = vld [vmem:[#allocation9 + $0x240] ss:$12 sps:$4 sm:$0xff]   ;;  %v6693_v61 = vld [vmem:[#allocation9 + $0x270] ss:$12 sps:$4 sm:$0xff]  }
 0x1a2   :  { %4634 = vmatmul.mubr.bf16.gmra.mrb[20].mxu0 %v7333_v42  ;;  %2501 = vmatprep.subr.bf16.mxu1 %v6620_v35  ;;  %v7343_v17 = vpack.c.bf16 %v2604_v11, %v2592_v6  ;;  %v2616_v35 = vmax.f32 %v6044_v25, 0.0  ;;  %v6046_v36 = vadd.f32 %v2266_v32, %v442_v51  ;;  %v6690_v51 = vld [vmem:[#allocation9 + $0x25c] ss:$12 sps:$4 sm:$0xff]   ;;  %v6700_v63 = vld [vmem:[#allocation9 + $0x28c] ss:$12 sps:$4 sm:$0xff]  }
 0x1a3   :  { %4649 = vmatpush1.bf16.msra.mxu0 %v6648_v45  ;;  %v2627_v37 = vmax.f32 %v6045_v31, 0.0  ;;  %v6641_v45 = vld [vmem:[#allocation6 + $0x62c] ss:$48 sps:$4 sm:$0xff]   ;;  %v6651_v62 = vld [vmem:[#allocation6 + $0x6e8] ss:$48 sps:$4 sm:$0xff]  }
 0x1a4   :  { %4650 = vmatprep.subr.bf16.mxu0 %v6656_v47  ;;  %v2628_v38 = vmax.f32 %v6046_v36, 0.0  ;;  %v6698_v1 = vld [vmem:[#allocation9 + $0x288] ss:$12 sps:$4 sm:$0xff]   ;;  %v6657_v2 = vld [vmem:[#allocation6 + $0x748] ss:$48 sps:$4 sm:$0xff]  }
 0x1a5   :  { %2502 = vmatpush1.bf16.msra.mxu1 %v6618_v30  ;;  %v7345_v30 = vpack.c.bf16 %v2627_v37, %v2615_v29  ;;  %v6671_v6 = vld [vmem:[#allocation6 + $0x80c] ss:$48 sps:$4 sm:$0xff]   ;;  %v6710_v7 = vld [vmem:[#allocation9 + $0x2bc] ss:$12 sps:$4 sm:$0xff]   ;;  %v6701_v29 = vld [vmem:[#allocation9 + $0x38] ss:$12 sps:$4 sm:$0xff]  }
 0x1a6   :  { %2503 = vmatprep.subr.bf16.mxu1 %v6623_v46  ;;  %v6686_v46 = vld [vmem:[#allocation9 + $0x244] ss:$12 sps:$4 sm:$0xff]   ;;  %v7347_v47 = vpack.c.bf16 %v2628_v38, %v2616_v35  ;;  %v6681_v20 = vld [vmem:[#allocation6 + $0x8c8] ss:$48 sps:$4 sm:$0xff]   ;;  %v6687_v22 = vld [vmem:[#allocation9 + $0xc8] ss:$12 sps:$4 sm:$0xff]  }
 0x1a7   :  { %4651 = vmatpush1.bf16.msra.mxu0 %v6654_v39  ;;  %v6639_v39 = vld [vmem:[#allocation6 + $0x628] ss:$48 sps:$4 sm:$0xff]   ;;  %v6677_v58 = vld [vmem:[#allocation6 + $0x86c] ss:$48 sps:$4 sm:$0xff]   ;;  %v6691_v25 = vld [vmem:[#allocation9 + $0x8] ss:$12 sps:$4 sm:$0xff]  }
 0x1a8   :  { %4652 = vmatprep.subr.bf16.mxu0 %v6662_v56  ;;  %v6688_v56 = vld [vmem:[#allocation9 + $0x258] ss:$12 sps:$4 sm:$0xff]   ;;  %v6713_v11 = vld [vmem:[#allocation9 + $0x2d0] ss:$12 sps:$4 sm:$0xff]   ;;  %v6692_v26 = vld [vmem:[#allocation9 + $0xe0] ss:$12 sps:$4 sm:$0xff]  }
 0x1a9   :  { %2504 = vmatpush1.bf16.msra.mxu1 %v6621_v54  ;;  %v6647_v54 = vld [vmem:[#allocation6 + $0x68c] ss:$48 sps:$4 sm:$0xff]   ;;  %v6717_v37 = vld [vmem:[#allocation9 + $0x158] ss:$12 sps:$4 sm:$0xff]  }
 0x1aa   :  { %2505 = vmatprep.subr.bf16.mxu1 %v6626_v60  ;;  %v6653_v60 = vld [vmem:[#allocation6 + $0x6ec] ss:$48 sps:$4 sm:$0xff]  }
 0x1ab   :  { %4653 = vmatpush1.bf16.msra.mxu0 %v6660_v0  ;;  %v6659_v0 = vld [vmem:[#allocation6 + $0x74c] ss:$48 sps:$4 sm:$0xff]  }
 0x1ac   :  { %4654 = vmatprep.subr.bf16.mxu0 %v6668_v8  ;;  %v6669_v8 = vld [vmem:[#allocation6 + $0x808] ss:$48 sps:$4 sm:$0xff]   ;;  %v6725_v21 = vld [vmem:[#allocation9 + $0x304] ss:$12 sps:$4 sm:$0xff]  }
 0x1ad   :  { %2506 = vmatpush1.bf16.msra.mxu1 %v6624_v5  ;;  %v6703_v5 = vld [vmem:[#allocation9 + $0x2a0] ss:$12 sps:$4 sm:$0xff]   ;;  %v6702_v31 = vld [vmem:[#allocation9 + $0x110] ss:$12 sps:$4 sm:$0xff]  }
 0x1ae   :  { %2507 = vmatprep.subr.bf16.mxu1 %v6629_v10  ;;  %v6708_v10 = vld [vmem:[#allocation9 + $0x2b8] ss:$12 sps:$4 sm:$0xff]   ;;  %v6706_v32 = vld [vmem:[#allocation9 + $0x50] ss:$12 sps:$4 sm:$0xff]   ;;  %v6712_v35 = vld [vmem:[#allocation9 + $0x140] ss:$12 sps:$4 sm:$0xff]  }
 0x1af   :  { %4655 = vmatpush1.bf16.msra.mxu0 %v6666_v16  ;;  %v6720_v16 = vld [vmem:[#allocation9 + $0x2ec] ss:$12 sps:$4 sm:$0xff]  }
 0x1b0   :  { %4656 = vmatprep.subr.bf16.mxu0 %v6674_v19  ;;  %v6718_v19 = vld [vmem:[#allocation9 + $0x2e8] ss:$12 sps:$4 sm:$0xff]  }
 0x1b1   :  { %2508 = vmatpush1.bf16.msra.mxu1 %v6627_v12  ;;  %v6675_v12 = vld [vmem:[#allocation6 + $0x868] ss:$48 sps:$4 sm:$0xff]  }
 0x1b2   :  { %2509 = vmatprep.subr.bf16.mxu1 %v6632_v18  ;;  %v6683_v18 = vld [vmem:[#allocation6 + $0x8cc] ss:$48 sps:$4 sm:$0xff]  }
 0x1b3   :  { %4657 = vmatpush1.bf16.msra.mxu0 %v6672_v28  ;;  %v6697_v28 = vld [vmem:[#allocation9 + $0xf8] ss:$12 sps:$4 sm:$0xff]  }
 0x1b4   :  { %4658 = vmatprep.subr.bf16.mxu0 %v6680_v34  ;;  %v6711_v34 = vld [vmem:[#allocation9 + $0x68] ss:$12 sps:$4 sm:$0xff]  }
 0x1b5   :  { %2510 = vmatpush1.bf16.msra.mxu1 %v6630_v27  ;;  %v6696_v27 = vld [vmem:[#allocation9 + $0x20] ss:$12 sps:$4 sm:$0xff]  }
 0x1b6   :  { %2511 = vmatprep.subr.bf16.mxu1 %v6635_v33  ;;  %v6707_v33 = vld [vmem:[#allocation9 + $0x128] ss:$12 sps:$4 sm:$0xff]  }
 0x1b7   :  { %4659 = vmatpush1.bf16.msra.mxu0 %v6678_v41 }
 0x1b8   :  { %4660 = vmatprep.subr.bf16.mxu0 %v6686_v46 }
 0x1b9   :  { %2512 = vmatpush1.bf16.msra.mxu1 %v6633_v40 }
 0x1ba   :  { %2534 = vmatprep.subr.bf16.mxu1 %v6641_v45 }
 0x1bb   :  { %4661 = vmatpush1.bf16.msra.mxu0 %v6684_v50  ;;  %v6721_v50 = vld [vmem:[#allocation9 + $0x98] ss:$12 sps:$4 sm:$0xff]  }
 0x1bc   :  { %2514 = vmatmul.mubr.bf16.vlgmr.msra.gmra.mrb[24].mxu1 %v7293_v14  ;;  %4662 = vmatprep.subr.bf16.mxu0 %v6690_v51  ;;  %v6665_v14 = vld [vmem:[#allocation6 + $0x7ac] ss:$48 sps:$4 sm:$0xff]  }
 0x1bd   :  { %2535 = vmatpush1.bf16.msra.mxu1 %v6639_v39  ;;  %2523 = vmatprep.mubr.bf16.mxu1 %v7296_v15  ;;  %v6663_v15 = vld [vmem:[#allocation6 + $0x7a8] ss:$48 sps:$4 sm:$0xff]  }
 0x1be   :  { %2536 = vmatprep.subr.bf16.mxu1 %v6647_v54  ;;  %v6722_v54 = vld [vmem:[#allocation9 + $0x170] ss:$12 sps:$4 sm:$0xff]  }
 0x1bf   :  { %4663 = vmatpush1.bf16.msra.mxu0 %v6688_v56 }
 0x1c0   :  { %4664 = vmatprep.subr.bf16.mxu0 %v6695_v23 }
 0x1c1   :  { %2537 = vmatpush1.bf16.msra.mxu1 %v6645_v57 }
 0x1c2   :  { %2538 = vmatprep.subr.bf16.mxu1 %v6653_v60 }
 0x1c3   :  { %4665 = vmatpush1.bf16.msra.mxu0 %v6693_v61 }
 0x1c4   :  { %2524 = vmatmul.mubr.bf16.gmra.mrb[28].mxu1 %v7299_v24  ;;  %4666 = vmatprep.subr.bf16.mxu0 %v6700_v63  ;;  %v6715_v24 = vld [vmem:[#allocation9 + $0x2d4] ss:$12 sps:$4 sm:$0xff]  }
 0x1c5   :  { %2539 = vmatpush1.bf16.msra.mxu1 %v6651_v62  ;;  %2566 = vmatprep.mubr.bf16.mxu1 %v7152_v9  ;;  %v6727_v63 = vld [vmem:[#allocation9 + $0x248] ss:$12 sps:$4 sm:$0xff]  }
 0x1c6   :  { %2540 = vmatprep.subr.bf16.mxu1 %v6659_v0 }
 0x1c7   :  { %4667 = vmatpush1.bf16.msra.mxu0 %v6698_v1 }
 0x1c8   :  { %4668 = vmatprep.subr.bf16.mxu0 %v6705_v4 }
 0x1c9   :  { %2541 = vmatpush1.bf16.msra.mxu1 %v6657_v2  ;;  %v6723_v2 = vld [vmem:[#allocation9 + $0x300] ss:$12 sps:$4 sm:$0xff]  }
 0x1ca   :  { %2542 = vmatprep.subr.bf16.mxu1 %v6665_v14 }
 0x1cb   :  { %4669 = vmatpush1.bf16.msra.mxu0 %v6703_v5 }
 0x1cc   :  { %4670 = vmatprep.subr.bf16.mxu0 %v6710_v7  ;;  %v6731_v7 = vld [vmem:[#allocation9 + $0x188] ss:$12 sps:$4 sm:$0xff]  }
 0x1cd   :  { %2543 = vmatpush1.bf16.msra.mxu1 %v6663_v15  ;;  %v6730_v15 = vld [vmem:[#allocation9 + $0x31c] ss:$12 sps:$4 sm:$0xff]  }
 0x1ce   :  { %2544 = vmatprep.subr.bf16.mxu1 %v6671_v6 }
 0x1cf   :  { %4671 = vmatpush1.bf16.msra.mxu0 %v6708_v10 }
 0x1d0   :  { %4672 = vmatprep.subr.bf16.mxu0 %v6715_v24 }
 0x1d1   :  { %2545 = vmatpush1.bf16.msra.mxu1 %v6669_v8 }
 0x1d2   :  { %2546 = vmatprep.subr.bf16.mxu1 %v6677_v58  ;;  %v6732_v58 = vld [vmem:[#allocation9 + $0x260] ss:$12 sps:$4 sm:$0xff]  }
 0x1d3   :  { %4673 = vmatpush1.bf16.msra.mxu0 %v6713_v11  ;;  %v6728_v11 = vld [vmem:[#allocation9 + $0x318] ss:$12 sps:$4 sm:$0xff]  }
 0x1d4   :  { %4674 = vmatprep.subr.bf16.mxu0 %v6720_v16 }
 0x1d5   :  { %2547 = vmatpush1.bf16.msra.mxu1 %v6675_v12 }
 0x1d6   :  { %2548 = vmatprep.subr.bf16.mxu1 %v6683_v18  ;;  %v6735_v18 = vld [vmem:[#allocation9 + $0x334] ss:$12 sps:$4 sm:$0xff]  }
 0x1d7   :  { %4675 = vmatpush1.bf16.msra.mxu0 %v6718_v19 }
 0x1d8   :  { %4697 = vmatprep.subr.bf16.mxu0 %v6725_v21  ;;  %v6736_v21 = vld [vmem:[#allocation9 + $0x1a0] ss:$12 sps:$4 sm:$0xff]  }
 0x1d9   :  { %2549 = vmatpush1.bf16.msra.mxu1 %v6681_v20 }
 0x1da   :  { %5855 = vmatprep.subr.bf16.mxu1 %v6687_v22 }
 0x1dc   :  { %2567 = vmatmul.mubr.bf16.vlgmr.msra.gmra.mrb[24].mxu1 %v7303_v43  ;;  %v7358_v43 = vsub.s32 2, %v7307_v48 }
 0x1dd   :  { %5856 = vmatpush3.bf16.msra.mxu1 %v6691_v25  ;;  %2576 = vmatprep.mubr.bf16.mxu1 %v7152_v9  ;;  %v433_v9 = vsub.s32 3, %v7307_v48  ;;  %v6737_v25 = vld [vmem:[#allocation9 + $0x278] ss:$12 sps:$4 sm:$0xff]  }
 0x1de   :  { %5857 = vmatprep.subr.bf16.mxu1 %v6692_v26  ;;  %v430_v36 = vrot.slane %v7316_v53, %v7358_v43  ;;  %v7373_v26 = vld [vmem:[#allocation8 + $0x8] sm:$0xf] }
 0x1e1   :  { %5858 = vmatpush3.bf16.msra.mxu1 %v6696_v27 }
 0x1e2   :  { %5859 = vmatprep.subr.bf16.mxu1 %v6697_v28  ;;  %v6733_v28 = vld [vmem:[#allocation9 + $0x330] ss:$12 sps:$4 sm:$0xff]  }
 0x1e4   :  { %2577 = vmatmul.mubr.bf16.gmra.mrb[28].mxu1 %v7309_v49  ;;  %v434_v49 = vrot.slane %v7316_v53, %v433_v9  ;;  %v6726_v53 = vld [vmem:[#allocation9 + $0xb0] ss:$12 sps:$4 sm:$0xff]  }
 0x1e5   :  { %5860 = vmatpush3.bf16.msra.mxu1 %v6701_v29  ;;  %4941 = vmatprep.mubr.bf16.mxu1 %v7327_v3  ;;  %v6716_v3 = vld [vmem:[#allocation9 + $0x80] ss:$12 sps:$4 sm:$0xff]   ;;  %v6741_v29 = vld [vmem:[#allocation9 + $0x1b8] ss:$12 sps:$4 sm:$0xff]  }
 0x1e6   :  { %5861 = vmatprep.subr.bf16.mxu1 %v6702_v31  ;;  %v6742_v31 = vld [vmem:[#allocation9 + $0x290] ss:$12 sps:$4 sm:$0xff]  }
 0x1e9   :  { %5862 = vmatpush3.bf16.msra.mxu1 %v6706_v32  ;;  %v458_v32 = vrot.slane %v7373_v26, %v7319_v55 }
 0x1ea   :  { %5863 = vmatprep.subr.bf16.mxu1 %v6707_v33  ;;  %v6738_v33 = vld [vmem:[#allocation9 + $0x348] ss:$12 sps:$4 sm:$0xff]  }
 0x1ed   :  { %5864 = vmatpush3.bf16.msra.mxu1 %v6711_v34  ;;  %v6745_v34 = vld [vmem:[#allocation9 + $0x364] ss:$12 sps:$4 sm:$0xff]  }
 0x1ee   :  { %5865 = vmatprep.subr.bf16.mxu1 %v6712_v35 }
 0x1ef   :  { %v2144_v38 = vpop.f32.mrb[8].mxu1 }
 0x1f0   :  { %v6031_v40 = vadd.f32 %v2144_v38, %v430_v36  ;;  %v2146_v41 = vpop.f32.mrb[9].mxu1 }
 0x1f1   :  { %v6032_v45 = vadd.f32 %v2146_v41, %v434_v49  ;;  %v2148_v46 = vpop.f32.mrb[10].mxu1  ;;  %5866 = vmatpush3.bf16.msra.mxu1 %v6716_v3  ;;  %v6743_v41 = vld [vmem:[#allocation9 + $0x360] ss:$12 sps:$4 sm:$0xff]  }
 0x1f2   :  { %v6033_v39 = vadd.f32 %v2148_v46, %v430_v36  ;;  %v2150_v51 = vpop.f32.mrb[11].mxu1  ;;  %5867 = vmatprep.subr.bf16.mxu1 %v6717_v37  ;;  %v2589_v57 = vmax.f32 %v6031_v40, 0.0  ;;  %v6747_v37 = vld [vmem:[#allocation9 + $0x2a8] ss:$12 sps:$4 sm:$0xff]  }
 0x1f3   :  { %v6034_v56 = vadd.f32 %v2150_v51, %v434_v49  ;;  %v2590_v23 = vmax.f32 %v6032_v45, 0.0 }
 0x1f4   :  { %v2601_v60 = vmax.f32 %v6033_v39, 0.0  ;;  %v6750_v39 = vld [vmem:[#allocation9 + $0x37c] ss:$12 sps:$4 sm:$0xff]  }
 0x1f5   :  { %v2602_v61 = vmax.f32 %v6034_v56, 0.0  ;;  %5868 = vmatpush3.bf16.msra.mxu1 %v6721_v50 }
 0x1f6   :  { %v7366_v62 = vpack.c.bf16 %v2601_v60, %v2589_v57  ;;  %5869 = vmatprep.subr.bf16.mxu1 %v6722_v54  ;;  %v2462_v35 = vpop.f32.mrb[8].mxu0  ;;  %v6751_v54 = vld [vmem:[#allocation9 + $0x1e8] ss:$12 sps:$4 sm:$0xff]   ;;  %v6752_v57 = vld [vmem:[#allocation9 + $0x2c0] ss:$12 sps:$4 sm:$0xff]  }
 0x1f7   :  { %v2650_v0 = vpack.c.bf16 %v2602_v61, %v2590_v23  ;;  %v2154_v1 = vpop.f32.mrb[12].mxu1  ;;  %v2464_v3 = vpop.f32.mrb[9].mxu0  ;;  %v6748_v23 = vld [vmem:[#allocation9 + $0x378] ss:$12 sps:$4 sm:$0xff]  }
 0x1f8   :  { %v6035_v14 = vadd.f32 %v2154_v1, %v430_v36  ;;  %v2156_v4 = vpop.f32.mrb[13].mxu1  ;;  %v6056_v38 = vadd.f32 %v2464_v3, %v458_v32  ;;  %v2466_v40 = vpop.f32.mrb[10].mxu0  ;;  %v6756_v1 = vld [vmem:[#allocation9 + $0x200] ss:$12 sps:$4 sm:$0xff]   ;;  %v6773_v3 = vld [vmem:[#allocation9 + $0x3f0] ss:$12 sps:$4 sm:$0xff]  }
 0x1f9   :  { %v6036_v5 = vadd.f32 %v2156_v4, %v434_v49  ;;  %v2158_v6 = vpop.f32.mrb[14].mxu1  ;;  %4676 = vmatprep.mubr.bf16.mxu0 %v2650_v0  ;;  %5870 = vmatpush3.bf16.msra.mxu1 %v6726_v53  ;;  %v2468_v50 = vpop.f32.mrb[11].mxu0  ;;  %v6755_v53 = vld [vmem:[#allocation9 + $0x394] ss:$12 sps:$4 sm:$0xff]   ;;  %v6757_v4 = vld [vmem:[#allocation9 + $0x2d8] ss:$12 sps:$4 sm:$0xff]  }
 0x1fa   :  { %v6037_v8 = vadd.f32 %v2158_v6, %v430_v36  ;;  %v2160_v10 = vpop.f32.mrb[15].mxu1  ;;  %4677 = vmatmul.mubr.bf16.vlgmr.msra.gmra.mrb[16].mxu0 %v7366_v62  ;;  %5883 = vmatprep.subr.bf16.mxu1 %v6727_v63  ;;  %v2613_v12 = vmax.f32 %v6035_v14, 0.0  ;;  %v6746_v36 = vld [vmem:[#allocation9 + $0x1d0] ss:$12 sps:$4 sm:$0xff]   ;;  %v6058_v51 = vadd.f32 %v2468_v50, %v458_v32 }
 0x1fb   :  { %v6038_v24 = vadd.f32 %v2160_v10, %v434_v49  ;;  %4698 = vmatpush1.bf16.msra.mxu0 %v6723_v2  ;;  %v2614_v19 = vmax.f32 %v6036_v5, 0.0  ;;  %v6753_v6 = vld [vmem:[#allocation9 + $0x390] ss:$12 sps:$4 sm:$0xff]  }
 0x1fc   :  { %v2625_v16 = vmax.f32 %v6037_v8, 0.0  ;;  %4942 = vmatmul.mubr.bf16.vlgmr.msra.gmra.mrb[32].mxu1 %v7325_v13  ;;  %4699 = vmatprep.subr.bf16.mxu0 %v6730_v15  ;;  %v6740_v13 = vld [vmem:[#allocation9 + $0x34c] ss:$12 sps:$4 sm:$0xff]   ;;  %v2608_v60 = vmax.f32 %v6058_v51, 0.0  ;;  %v6790_v50 = vld [vmem:[#allocation9 + $0x43c] ss:$12 sps:$4 sm:$0xff]  }
 0x1fd   :  { %v2626_v20 = vmax.f32 %v6038_v24, 0.0  ;;  %4949 = vmatprep.mubr.bf16.mxu1 %v7335_v44  ;;  %5884 = vmatpush3.bf16.msra.mxu1 %v6731_v7  ;;  %v454_v44 = vrot.slane %v7373_v26, %v7314_v52  ;;  %v6788_v51 = vld [vmem:[#allocation9 + $0x438] ss:$12 sps:$4 sm:$0xff]  }
 0x1fe   :  { %v7371_v22 = vpack.c.bf16 %v2625_v16, %v2613_v12  ;;  %5885 = vmatprep.subr.bf16.mxu1 %v6732_v58  ;;  %v6760_v58 = vld [vmem:[#allocation9 + $0x3ac] ss:$12 sps:$4 sm:$0xff]  }
 0x1ff   :  { %v7375_v27 = vpack.c.bf16 %v2626_v20, %v2614_v19  ;;  %4700 = vmatpush1.bf16.msra.mxu0 %v6728_v11  ;;  %v6055_v49 = vadd.f32 %v2462_v35, %v454_v44  ;;  %v6057_v46 = vadd.f32 %v2466_v40, %v454_v44  ;;  %v6761_v12 = vld [vmem:[#allocation9 + $0x218] ss:$12 sps:$4 sm:$0xff]   ;;  %v6758_v20 = vld [vmem:[#allocation9 + $0x3a8] ss:$12 sps:$4 sm:$0xff]   ;;  %v6782_v40 = vld [vmem:[#allocation9 + $0x410] ss:$12 sps:$4 sm:$0xff]  }
 0x200   :  { %4701 = vmatprep.subr.bf16.mxu0 %v6735_v18  ;;  %v6762_v18 = vld [vmem:[#allocation9 + $0x2f0] ss:$12 sps:$4 sm:$0xff]   ;;  %v6775_v35 = vld [vmem:[#allocation9 + $0x3f4] ss:$12 sps:$4 sm:$0xff]  }
 0x201   :  { %4686 = vmatprep.mubr.bf16.mxu0 %v7375_v27  ;;  %5886 = vmatpush3.bf16.msra.mxu1 %v6736_v21  ;;  %v2595_v45 = vmax.f32 %v6055_v49, 0.0  ;;  %v2607_v56 = vmax.f32 %v6057_v46, 0.0  ;;  %v6777_v49 = vld [vmem:[#allocation9 + $0x3f8] ss:$12 sps:$4 sm:$0xff]   ;;  %v6783_v46 = vld [vmem:[#allocation9 + $0x420] ss:$12 sps:$4 sm:$0xff]  }
 0x202   :  { %4687 = vmatmul.mubr.bf16.gmra.mrb[20].mxu0 %v7371_v22  ;;  %5887 = vmatprep.subr.bf16.mxu1 %v6737_v25  ;;  %v6765_v25 = vld [vmem:[#allocation9 + $0x3c4] ss:$12 sps:$4 sm:$0xff]  }
 0x203   :  { %4702 = vmatpush1.bf16.msra.mxu0 %v6733_v28  ;;  %4729 = vmatprep.mubr.bf16.mxu0 %v7343_v17  ;;  %v7385_v61 = vpack.c.bf16 %v2607_v56, %v2595_v45  ;;  %v6787_v45 = vld [vmem:[#allocation9 + $0x428] ss:$12 sps:$4 sm:$0xff]   ;;  %v6797_v56 = vld [vmem:[#allocation9 + $0x458] ss:$12 sps:$4 sm:$0xff]  }
 0x204   :  { %4950 = vmatmul.mubr.bf16.gmra.mrb[36].mxu1 %v7333_v42  ;;  %4703 = vmatprep.subr.bf16.mxu0 %v6740_v13  ;;  %v2596_v42 = vmax.f32 %v6056_v38, 0.0  ;;  %v6766_v13 = vld [vmem:[#allocation9 + $0x230] ss:$12 sps:$4 sm:$0xff]   ;;  %v6781_v38 = vld [vmem:[#allocation9 + $0x338] ss:$12 sps:$4 sm:$0xff]  }
 0x205   :  { %5888 = vmatpush3.bf16.msra.mxu1 %v6741_v29  ;;  %4990 = vmatprep.mubr.bf16.mxu1 %v2650_v0  ;;  %v2472_v0 = vpop.f32.mrb[12].mxu0  ;;  %v6767_v29 = vld [vmem:[#allocation9 + $0x3c8] ss:$12 sps:$4 sm:$0xff]  }
 0x206   :  { %5889 = vmatprep.subr.bf16.mxu1 %v6742_v31  ;;  %v7387_v63 = vpack.c.bf16 %v2608_v60, %v2596_v42  ;;  %v6059_v2 = vadd.f32 %v2472_v0, %v454_v44  ;;  %v2474_v14 = vpop.f32.mrb[13].mxu0  ;;  %v6770_v31 = vld [vmem:[#allocation9 + $0x3dc] ss:$12 sps:$4 sm:$0xff]   ;;  %v6792_v42 = vld [vmem:[#allocation9 + $0x440] ss:$12 sps:$4 sm:$0xff]  }
 0x207   :  { %4704 = vmatpush1.bf16.msra.mxu0 %v6738_v33  ;;  %v6060_v15 = vadd.f32 %v2474_v14, %v458_v32  ;;  %v2476_v5 = vpop.f32.mrb[14].mxu0  ;;  %v6772_v33 = vld [vmem:[#allocation9 + $0x3e0] ss:$12 sps:$4 sm:$0xff]   ;;  %v6801_v60 = vld [vmem:[#allocation9 + $0x398] ss:$12 sps:$4 sm:$0xff]  }
 0x208   :  { %4705 = vmatprep.subr.bf16.mxu0 %v6745_v34  ;;  %v2619_v7 = vmax.f32 %v6059_v2, 0.0  ;;  %v6061_v8 = vadd.f32 %v2476_v5, %v454_v44  ;;  %v2478_v10 = vpop.f32.mrb[15].mxu0  ;;  %v6763_v44 = vld [vmem:[#allocation9 + $0x3c0] ss:$12 sps:$4 sm:$0xff]   ;;  %v6768_v34 = vld [vmem:[#allocation9 + $0x3d8] ss:$12 sps:$4 sm:$0xff]  }
 0x209   :  { %5890 = vmatpush3.bf16.msra.mxu1 %v6746_v36  ;;  %v2620_v24 = vmax.f32 %v6060_v15, 0.0  ;;  %v6062_v11 = vadd.f32 %v2478_v10, %v458_v32  ;;  %v6771_v32 = vld [vmem:[#allocation9 + $0x308] ss:$12 sps:$4 sm:$0xff]   ;;  %v6776_v36 = vld [vmem:[#allocation9 + $0x320] ss:$12 sps:$4 sm:$0xff]  }
 0x20a   :  { %5891 = vmatprep.subr.bf16.mxu1 %v6747_v37  ;;  %v2631_v16 = vmax.f32 %v6061_v8, 0.0  ;;  %v6780_v37 = vld [vmem:[#allocation9 + $0x40c] ss:$12 sps:$4 sm:$0xff]   ;;  %v6805_v0 = vld [vmem:[#allocation9 + $0x484] ss:$12 sps:$4 sm:$0xff]  }
 0x20b   :  { %4706 = vmatpush1.bf16.msra.mxu0 %v6743_v41  ;;  %v2632_v19 = vmax.f32 %v6062_v11, 0.0  ;;  %v6778_v41 = vld [vmem:[#allocation9 + $0x408] ss:$12 sps:$4 sm:$0xff]   ;;  %v6803_v14 = vld [vmem:[#allocation9 + $0x480] ss:$12 sps:$4 sm:$0xff]  }
 0x20c   :  { %4707 = vmatprep.subr.bf16.mxu0 %v6750_v39  ;;  %v7389_v21 = vpack.c.bf16 %v2631_v16, %v2619_v7  ;;  %v6791_v39 = vld [vmem:[#allocation9 + $0x368] ss:$12 sps:$4 sm:$0xff]   ;;  %v6812_v5 = vld [vmem:[#allocation9 + $0x560] ss:$12 sps:$4 sm:$0xff]   ;;  %v6817_v10 = vld [vmem:[#allocation9 + $0x578] ss:$12 sps:$4 sm:$0xff]  }
 0x20d   :  { %5892 = vmatpush3.bf16.msra.mxu1 %v6751_v54  ;;  %v7391_v28 = vpack.c.bf16 %v2632_v19, %v2620_v24  ;;  %v6796_v54 = vld [vmem:[#allocation9 + $0x380] ss:$12 sps:$4 sm:$0xff]   ;;  %v6807_v2 = vld [vmem:[#allocation9 + $0x548] ss:$12 sps:$4 sm:$0xff]   ;;  %v6821_v11 = vld [vmem:[#allocation9 + $0x4b8] ss:$12 sps:$4 sm:$0xff]  }
 0x20e   :  { %5893 = vmatprep.subr.bf16.mxu1 %v6752_v57  ;;  %v6800_v57 = vld [vmem:[#allocation9 + $0x46c] ss:$12 sps:$4 sm:$0xff]   ;;  %v6811_v15 = vld [vmem:[#allocation9 + $0x488] ss:$12 sps:$4 sm:$0xff]   ;;  %v6826_v16 = vld [vmem:[#allocation9 + $0x4d0] ss:$12 sps:$4 sm:$0xff]  }
 0x20f   :  { %4708 = vmatpush1.bf16.msra.mxu0 %v6748_v23  ;;  %v6802_v23 = vld [vmem:[#allocation9 + $0x470] ss:$12 sps:$4 sm:$0xff]   ;;  %v6815_v7 = vld [vmem:[#allocation9 + $0x4b4] ss:$12 sps:$4 sm:$0xff]   ;;  %v6820_v24 = vld [vmem:[#allocation9 + $0x4cc] ss:$12 sps:$4 sm:$0xff]  }
 0x210   :  { %4709 = vmatprep.subr.bf16.mxu0 %v6755_v53  ;;  %v6798_v53 = vld [vmem:[#allocation9 + $0x468] ss:$12 sps:$4 sm:$0xff]   ;;  %v6816_v8 = vld [vmem:[#allocation9 + $0x4a0] ss:$12 sps:$4 sm:$0xff]  }
 0x211   :  { %5894 = vmatpush3.bf16.msra.mxu1 %v6756_v1  ;;  %v6806_v1 = vld [vmem:[#allocation9 + $0x3b0] ss:$12 sps:$4 sm:$0xff]   ;;  %v6823_v19 = vld [vmem:[#allocation9 + $0x4e0] ss:$12 sps:$4 sm:$0xff]  }
 0x212   :  { %5895 = vmatprep.subr.bf16.mxu1 %v6757_v4  ;;  %v6810_v4 = vld [vmem:[#allocation9 + $0x49c] ss:$12 sps:$4 sm:$0xff]  }
 0x213   :  { %4710 = vmatpush1.bf16.msra.mxu0 %v6753_v6  ;;  %v6808_v6 = vld [vmem:[#allocation9 + $0x498] ss:$12 sps:$4 sm:$0xff]  }
 0x214   :  { %4711 = vmatprep.subr.bf16.mxu0 %v6760_v58  ;;  %v6813_v58 = vld [vmem:[#allocation9 + $0x4b0] ss:$12 sps:$4 sm:$0xff]  }
 0x215   :  { %5896 = vmatpush3.bf16.msra.mxu1 %v6761_v12  ;;  %v6822_v12 = vld [vmem:[#allocation9 + $0x590] ss:$12 sps:$4 sm:$0xff]  }
 0x216   :  { %5897 = vmatprep.subr.bf16.mxu1 %v6762_v18  ;;  %v6827_v18 = vld [vmem:[#allocation9 + $0x5a8] ss:$12 sps:$4 sm:$0xff]  }
 0x217   :  { %4712 = vmatpush1.bf16.msra.mxu0 %v6758_v20  ;;  %v6830_v20 = vld [vmem:[#allocation9 + $0x4fc] ss:$12 sps:$4 sm:$0xff]  }
 0x218   :  { %4713 = vmatprep.subr.bf16.mxu0 %v6765_v25  ;;  %v445_v25 = vsub.s32 6, %v7307_v48 }
 0x219   :  { %5898 = vmatpush3.bf16.msra.mxu1 %v6766_v13  ;;  %v6831_v13 = vld [vmem:[#allocation9 + $0x4e8] ss:$12 sps:$4 sm:$0xff]  }
 0x21a   :  { %5911 = vmatprep.subr.bf16.mxu1 %v6767_v29  ;;  %v449_v29 = vsub.s32 7, %v7307_v48  ;;  %v6950_v48 = vld [vmem:[#allocation9 + $0x784] ss:$12 sps:$4 sm:$0xff]  }
 0x21b   :  { %4714 = vmatpush1.bf16.msra.mxu0 %v6763_v44  ;;  %v6832_v44 = vld [vmem:[#allocation9 + $0x5c0] ss:$12 sps:$4 sm:$0xff]  }
 0x21c   :  { %4991 = vmatmul.mubr.bf16.vlgmr.msra.gmra.mrb[40].mxu1 %v7366_v62  ;;  %4715 = vmatprep.subr.bf16.mxu0 %v6770_v31  ;;  %v6785_v62 = vld [vmem:[#allocation9 + $0x424] ss:$12 sps:$4 sm:$0xff]   ;;  %v7002_v31 = vld [vmem:[#allocation8] sm:$0xff] }
 0x21d   :  { %4998 = vmatprep.mubr.bf16.mxu1 %v7375_v27  ;;  %5912 = vmatpush3.bf16.msra.mxu1 %v6771_v32  ;;  %v6786_v27 = vld [vmem:[#allocation9 + $0x350] ss:$12 sps:$4 sm:$0xff]   ;;  %v446_v32 = vrot.slane %v7002_v31, %v445_v25 }
 0x21e   :  { %5913 = vmatprep.subr.bf16.mxu1 %v6772_v33  ;;  %v6835_v33 = vld [vmem:[#allocation9 + $0x514] ss:$12 sps:$4 sm:$0xff]  }
 0x21f   :  { %4716 = vmatpush1.bf16.msra.mxu0 %v6768_v34  ;;  %v450_v34 = vrot.slane %v7002_v31, %v449_v29  ;;  %v6860_v29 = vld [vmem:[#allocation9 + $0x58c] ss:$12 sps:$4 sm:$0xff]   ;;  %v6858_v31 = vld [vmem:[#allocation9 + $0x588] ss:$12 sps:$4 sm:$0xff]  }
 0x220   :  { %4717 = vmatprep.subr.bf16.mxu0 %v6775_v35  ;;  %v6836_v35 = vld [vmem:[#allocation9 + $0x500] ss:$12 sps:$4 sm:$0xff]  }
 0x221   :  { %5914 = vmatpush3.bf16.msra.mxu1 %v6776_v36  ;;  %v6837_v36 = vld [vmem:[#allocation9 + $0x5d8] ss:$12 sps:$4 sm:$0xff]  }
 0x222   :  { %5915 = vmatprep.subr.bf16.mxu1 %v6777_v49 }
 0x223   :  { %4718 = vmatpush1.bf16.msra.mxu0 %v6773_v3  ;;  %v6833_v3 = vld [vmem:[#allocation9 + $0x510] ss:$12 sps:$4 sm:$0xff]  }
 0x224   :  { %4999 = vmatmul.mubr.bf16.gmra.mrb[44].mxu1 %v7371_v22  ;;  %4719 = vmatprep.subr.bf16.mxu0 %v6780_v37  ;;  %v6795_v22 = vld [vmem:[#allocation9 + $0x454] ss:$12 sps:$4 sm:$0xff]  }
 0x225   :  { %5916 = vmatpush3.bf16.msra.mxu1 %v6781_v38  ;;  %5039 = vmatprep.mubr.bf16.mxu1 %v7343_v17  ;;  %v6793_v17 = vld [vmem:[#allocation9 + $0x450] ss:$12 sps:$4 sm:$0xff]  }
 0x226   :  { %5917 = vmatprep.subr.bf16.mxu1 %v6782_v40  ;;  %v6840_v40 = vld [vmem:[#allocation9 + $0x52c] ss:$12 sps:$4 sm:$0xff]  }
 0x227   :  { %4720 = vmatpush1.bf16.msra.mxu0 %v6778_v41 }
 0x228   :  { %4721 = vmatprep.subr.bf16.mxu0 %v6785_v62 }
 0x229   :  { %5918 = vmatpush3.bf16.msra.mxu1 %v6786_v27  ;;  %v6841_v27 = vld [vmem:[#allocation9 + $0x518] ss:$12 sps:$4 sm:$0xff]  }
 0x22a   :  { %5919 = vmatprep.subr.bf16.mxu1 %v6787_v45 }
 0x22b   :  { %4722 = vmatpush1.bf16.msra.mxu0 %v6783_v46 }
 0x22c   :  { %4723 = vmatprep.subr.bf16.mxu0 %v6790_v50 }
 0x22d   :  { %5920 = vmatpush3.bf16.msra.mxu1 %v6791_v39  ;;  %v6842_v39 = vld [vmem:[#allocation9 + $0x5f0] ss:$12 sps:$4 sm:$0xff]  }
 0x22e   :  { %5921 = vmatprep.subr.bf16.mxu1 %v6792_v42 }
 0x22f   :  { %4724 = vmatpush1.bf16.msra.mxu0 %v6788_v51  ;;  %v6838_v51 = vld [vmem:[#allocation9 + $0x528] ss:$12 sps:$4 sm:$0xff]  }
 0x230   :  { %4725 = vmatprep.subr.bf16.mxu0 %v6795_v22 }
 0x231   :  { %5922 = vmatpush3.bf16.msra.mxu1 %v6796_v54  ;;  %v6845_v54 = vld [vmem:[#allocation9 + $0x544] ss:$12 sps:$4 sm:$0xff]  }
 0x232   :  { %5923 = vmatprep.subr.bf16.mxu1 %v6797_v56 }
 0x233   :  { %4726 = vmatpush1.bf16.msra.mxu0 %v6793_v17 }
 0x234   :  { %4727 = vmatprep.subr.bf16.mxu0 %v6800_v57  ;;  %v6846_v57 = vld [vmem:[#allocation9 + $0x530] ss:$12 sps:$4 sm:$0xff]  }
 0x235   :  { %5924 = vmatpush3.bf16.msra.mxu1 %v6801_v60 }
 0x236   :  { %5925 = vmatprep.subr.bf16.mxu1 %v6802_v23  ;;  %v6847_v23 = vld [vmem:[#allocation9 + $0x6c8] ss:$12 sps:$4 sm:$0xff]  }
 0x237   :  { %4728 = vmatpush1.bf16.msra.mxu0 %v6798_v53 }
 0x238   :  { %4750 = vmatprep.subr.bf16.mxu0 %v6805_v0 }
 0x239   :  { %5926 = vmatpush3.bf16.msra.mxu1 %v6806_v1  ;;  %v6843_v1 = vld [vmem:[#allocation9 + $0x540] ss:$12 sps:$4 sm:$0xff]  }
 0x23a   :  { %4730 = vmatmul.mubr.bf16.vlgmr.msra.gmra.mrb[16].mxu0 %v7341_v59  ;;  %5939 = vmatprep.subr.bf16.mxu1 %v6807_v2 }
 0x23b   :  { %4739 = vmatprep.mubr.bf16.mxu0 %v7347_v47  ;;  %4751 = vmatpush1.bf16.msra.mxu0 %v6803_v14 }
 0x23c   :  { %5040 = vmatmul.mubr.bf16.vlgmr.msra.gmra.mrb[48].mxu1 %v7341_v59  ;;  %4752 = vmatprep.subr.bf16.mxu0 %v6810_v4  ;;  %v6818_v59 = vld [vmem:[#allocation9 + $0x4c8] ss:$12 sps:$4 sm:$0xff]  }
 0x23d   :  { %5047 = vmatprep.mubr.bf16.mxu1 %v7347_v47  ;;  %5940 = vmatpush3.bf16.msra.mxu1 %v6811_v15  ;;  %v6825_v47 = vld [vmem:[#allocation9 + $0x4e4] ss:$12 sps:$4 sm:$0xff]   ;;  %v6850_v4 = vld [vmem:[#allocation9 + $0x55c] ss:$12 sps:$4 sm:$0xff]  }
 0x23e   :  { %5941 = vmatprep.subr.bf16.mxu1 %v6812_v5 }
 0x23f   :  { %4753 = vmatpush1.bf16.msra.mxu0 %v6808_v6  ;;  %v6851_v6 = vld [vmem:[#allocation9 + $0x608] ss:$12 sps:$4 sm:$0xff]  }
 0x240   :  { %4754 = vmatprep.subr.bf16.mxu0 %v6815_v7 }
 0x241   :  { %5942 = vmatpush3.bf16.msra.mxu1 %v6816_v8 }
 0x242   :  { %4740 = vmatmul.mubr.bf16.gmra.mrb[20].mxu0 %v7345_v30  ;;  %5943 = vmatprep.subr.bf16.mxu1 %v6817_v10 }
 0x243   :  { %4755 = vmatpush1.bf16.msra.mxu0 %v6813_v58  ;;  %v6852_v58 = vld [vmem:[#allocation9 + $0x6e0] ss:$12 sps:$4 sm:$0xff]  }
 0x244   :  { %5048 = vmatmul.mubr.bf16.gmra.mrb[52].mxu1 %v7345_v30  ;;  %4756 = vmatprep.subr.bf16.mxu0 %v6820_v24  ;;  %v6828_v30 = vld [vmem:[#allocation9 + $0x4f8] ss:$12 sps:$4 sm:$0xff]  }
 0x245   :  { %5944 = vmatpush3.bf16.msra.mxu1 %v6821_v11 }
 0x246   :  { %5945 = vmatprep.subr.bf16.mxu1 %v6822_v12  ;;  %v6848_v12 = vld [vmem:[#allocation9 + $0x558] ss:$12 sps:$4 sm:$0xff]  }
 0x247   :  { %4757 = vmatpush1.bf16.msra.mxu0 %v6818_v59 }
 0x248   :  { %4758 = vmatprep.subr.bf16.mxu0 %v6825_v47  ;;  %v6855_v47 = vld [vmem:[#allocation9 + $0x574] ss:$12 sps:$4 sm:$0xff]  }
 0x249   :  { %5946 = vmatpush3.bf16.msra.mxu1 %v6826_v16 }
 0x24a   :  { %5947 = vmatprep.subr.bf16.mxu1 %v6827_v18  ;;  %v6856_v18 = vld [vmem:[#allocation9 + $0x620] ss:$12 sps:$4 sm:$0xff]  }
 0x24b   :  { %4759 = vmatpush1.bf16.msra.mxu0 %v6823_v19 }
 0x24c   :  { %4760 = vmatprep.subr.bf16.mxu0 %v6830_v20  ;;  %v6857_v20 = vld [vmem:[#allocation9 + $0x6f8] ss:$12 sps:$4 sm:$0xff]  }
 0x24d   :  { %5948 = vmatpush3.bf16.msra.mxu1 %v6831_v13  ;;  %v6853_v13 = vld [vmem:[#allocation9 + $0x570] ss:$12 sps:$4 sm:$0xff]  }
 0x24e   :  { %5949 = vmatprep.subr.bf16.mxu1 %v6832_v44  ;;  %v6861_v44 = vld [vmem:[#allocation9 + $0x638] ss:$12 sps:$4 sm:$0xff]  }
 0x24f   :  { %4761 = vmatpush1.bf16.msra.mxu0 %v6828_v30  ;;  %v2356_v49 = vpop.f32.mrb[16].mxu1  ;;  %v6862_v30 = vld [vmem:[#allocation9 + $0x710] ss:$12 sps:$4 sm:$0xff]  }
 0x250   :  { %v6047_v37 = vadd.f32 %v2356_v49, %v446_v32  ;;  %v2358_v38 = vpop.f32.mrb[17].mxu1  ;;  %4762 = vmatprep.subr.bf16.mxu0 %v6835_v33  ;;  %v6866_v33 = vld [vmem:[#allocation9 + $0x650] ss:$12 sps:$4 sm:$0xff]   ;;  %v6871_v49 = vld [vmem:[#allocation9 + $0x668] ss:$12 sps:$4 sm:$0xff]  }
 0x251   :  { %v6048_v41 = vadd.f32 %v2358_v38, %v450_v34  ;;  %v2360_v62 = vpop.f32.mrb[18].mxu1  ;;  %5950 = vmatpush3.bf16.msra.mxu1 %v6836_v35  ;;  %v6863_v35 = vld [vmem:[#allocation9 + $0x5a0] ss:$12 sps:$4 sm:$0xff]  }
 0x252   :  { %v2593_v45 = vmax.f32 %v6047_v37, 0.0  ;;  %v6049_v46 = vadd.f32 %v2360_v62, %v446_v32  ;;  %v2362_v50 = vpop.f32.mrb[19].mxu1  ;;  %5951 = vmatprep.subr.bf16.mxu1 %v6837_v36  ;;  %v6870_v36 = vld [vmem:[#allocation9 + $0x5bc] ss:$12 sps:$4 sm:$0xff]   ;;  %v6868_v37 = vld [vmem:[#allocation9 + $0x5b8] ss:$12 sps:$4 sm:$0xff]  }
 0x253   :  { %v6050_v42 = vadd.f32 %v2362_v50, %v450_v34  ;;  %4763 = vmatpush1.bf16.msra.mxu0 %v6833_v3  ;;  %v2594_v56 = vmax.f32 %v6048_v41, 0.0  ;;  %v6872_v3 = vld [vmem:[#allocation9 + $0x740] ss:$12 sps:$4 sm:$0xff]   ;;  %v6877_v41 = vld [vmem:[#allocation9 + $0x758] ss:$12 sps:$4 sm:$0xff]  }
 0x254   :  { %v2605_v22 = vmax.f32 %v6049_v46, 0.0  ;;  %4764 = vmatprep.subr.bf16.mxu0 %v6840_v40  ;;  %v6875_v38 = vld [vmem:[#allocation9 + $0x5d4] ss:$12 sps:$4 sm:$0xff]   ;;  %v6873_v62 = vld [vmem:[#allocation9 + $0x5d0] ss:$12 sps:$4 sm:$0xff]  }
 0x255   :  { %v2606_v17 = vmax.f32 %v6050_v42, 0.0  ;;  %5952 = vmatpush3.bf16.msra.mxu1 %v6841_v27  ;;  %v6876_v40 = vld [vmem:[#allocation9 + $0x680] ss:$12 sps:$4 sm:$0xff]   ;;  %v6882_v46 = vld [vmem:[#allocation9 + $0x770] ss:$12 sps:$4 sm:$0xff]  }
 0x256   :  { %v7405_v60 = vpack.c.bf16 %v2605_v22, %v2593_v45  ;;  %5953 = vmatprep.subr.bf16.mxu1 %v6842_v39  ;;  %v6880_v27 = vld [vmem:[#allocation9 + $0x5ec] ss:$12 sps:$4 sm:$0xff]   ;;  %v6878_v50 = vld [vmem:[#allocation9 + $0x5e8] ss:$12 sps:$4 sm:$0xff]   ;;  %v6885_v39 = vld [vmem:[#allocation9 + $0x604] ss:$12 sps:$4 sm:$0xff]  }
 0x257   :  { %v2654_v53 = vpack.c.bf16 %v2606_v17, %v2594_v56  ;;  %4765 = vmatpush1.bf16.msra.mxu0 %v6838_v51  ;;  %v2366_v0 = vpop.f32.mrb[20].mxu1  ;;  %v6881_v45 = vld [vmem:[#allocation9 + $0x698] ss:$12 sps:$4 sm:$0xff]   ;;  %v6886_v42 = vld [vmem:[#allocation9 + $0x6b0] ss:$12 sps:$4 sm:$0xff]  }
 0x258   :  { %v6051_v2 = vadd.f32 %v2366_v0, %v446_v32  ;;  %4766 = vmatprep.subr.bf16.mxu0 %v6845_v54  ;;  %v2368_v14 = vpop.f32.mrb[21].mxu1  ;;  %v6911_v51 = vld [vmem:[#allocation9 + $0x848] ss:$12 sps:$4 sm:$0xff]   ;;  %v6883_v22 = vld [vmem:[#allocation9 + $0x600] ss:$12 sps:$4 sm:$0xff]  }
 0x259   :  { %4782 = vmatprep.mubr.bf16.mxu0 %v2654_v53  ;;  %5954 = vmatpush3.bf16.msra.mxu1 %v6846_v57  ;;  %v6052_v15 = vadd.f32 %v2368_v14, %v450_v34  ;;  %v2370_v5 = vpop.f32.mrb[22].mxu1  ;;  %v6889_v54 = vld [vmem:[#allocation9 + $0x61c] ss:$12 sps:$4 sm:$0xff]   ;;  %v6916_v17 = vld [vmem:[#allocation9 + $0x860] ss:$12 sps:$4 sm:$0xff]  }
 0x25a   :  { %v2617_v7 = vmax.f32 %v6051_v2, 0.0  ;;  %5088 = vmatprep.mubr.bf16.mxu1 %v2654_v53  ;;  %v6053_v8 = vadd.f32 %v2370_v5, %v446_v32  ;;  %v2372_v10 = vpop.f32.mrb[23].mxu1  ;;  %5967 = vmatprep.subr.bf16.mxu1 %v6847_v23  ;;  %v6865_v32 = vld [vmem:[#allocation9 + $0x5a4] ss:$12 sps:$4 sm:$0xff]   ;;  %v6912_v56 = vld [vmem:[#allocation9 + $0x788] ss:$12 sps:$4 sm:$0xff]  }
 0x25b   :  { %v2618_v24 = vmax.f32 %v6052_v15, 0.0  ;;  %4767 = vmatpush1.bf16.msra.mxu0 %v6843_v1  ;;  %v6054_v11 = vadd.f32 %v2372_v10, %v450_v34  ;;  %v6867_v34 = vld [vmem:[#allocation9 + $0x728] ss:$12 sps:$4 sm:$0xff]   ;;  %v6887_v57 = vld [vmem:[#allocation9 + $0x618] ss:$12 sps:$4 sm:$0xff]  }
 0x25c   :  { %v2629_v59 = vmax.f32 %v6053_v8, 0.0  ;;  %5089 = vmatmul.mubr.bf16.vlgmr.msra.gmra.mrb[56].mxu1 %v7405_v60  ;;  %4768 = vmatprep.subr.bf16.mxu0 %v6850_v4  ;;  %v6892_v23 = vld [vmem:[#allocation9 + $0x634] ss:$12 sps:$4 sm:$0xff]   ;;  %v6921_v0 = vld [vmem:[#allocation9 + $0x878] ss:$12 sps:$4 sm:$0xff]  }
 0x25d   :  { %v2630_v16 = vmax.f32 %v6054_v11, 0.0  ;;  %5968 = vmatpush3.bf16.msra.mxu1 %v6851_v6  ;;  %v6917_v53 = vld [vmem:[#allocation9 + $0x7a0] ss:$12 sps:$4 sm:$0xff]   ;;  %v6890_v1 = vld [vmem:[#allocation9 + $0x630] ss:$12 sps:$4 sm:$0xff]  }
 0x25e   :  { %v7408_v19 = vpack.c.bf16 %v2629_v59, %v2617_v7  ;;  %5969 = vmatprep.subr.bf16.mxu1 %v6852_v58  ;;  %v6895_v2 = vld [vmem:[#allocation9 + $0x64c] ss:$12 sps:$4 sm:$0xff]   ;;  %v6926_v14 = vld [vmem:[#allocation9 + $0x890] ss:$12 sps:$4 sm:$0xff]   ;;  %v6893_v4 = vld [vmem:[#allocation9 + $0x648] ss:$12 sps:$4 sm:$0xff]  }
 0x25f   :  { %v2666_v25 = vpack.c.bf16 %v2630_v16, %v2618_v24  ;;  %4769 = vmatpush1.bf16.msra.mxu0 %v6848_v12  ;;  %v6898_v15 = vld [vmem:[#allocation9 + $0x664] ss:$12 sps:$4 sm:$0xff]   ;;  %v6931_v6 = vld [vmem:[#allocation9 + $0x8a8] ss:$12 sps:$4 sm:$0xff]   ;;  %v6896_v7 = vld [vmem:[#allocation9 + $0x660] ss:$12 sps:$4 sm:$0xff]  }
 0x260   :  { %4770 = vmatprep.subr.bf16.mxu0 %v6855_v47  ;;  %v6927_v5 = vld [vmem:[#allocation9 + $0x7d0] ss:$12 sps:$4 sm:$0xff]   ;;  %v6932_v10 = vld [vmem:[#allocation9 + $0x7e8] ss:$12 sps:$4 sm:$0xff]   ;;  %v6936_v58 = vld [vmem:[#allocation9 + $0x8c0] ss:$12 sps:$4 sm:$0xff]  }
 0x261   :  { %5970 = vmatpush3.bf16.msra.mxu1 %v6856_v18  ;;  %5096 = vmatprep.mubr.bf16.mxu1 %v2666_v25  ;;  %v6901_v8 = vld [vmem:[#allocation9 + $0x67c] ss:$12 sps:$4 sm:$0xff]   ;;  %v6899_v24 = vld [vmem:[#allocation9 + $0x678] ss:$12 sps:$4 sm:$0xff]   ;;  %v6937_v11 = vld [vmem:[#allocation9 + $0x800] ss:$12 sps:$4 sm:$0xff]  }
 0x262   :  { %5971 = vmatprep.subr.bf16.mxu1 %v6857_v20  ;;  %v6941_v12 = vld [vmem:[#allocation9 + $0x8d8] ss:$12 sps:$4 sm:$0xff]   ;;  %v6902_v59 = vld [vmem:[#allocation9 + $0x690] ss:$12 sps:$4 sm:$0xff]  }
 0x263   :  { %4771 = vmatpush1.bf16.msra.mxu0 %v6853_v13  ;;  %v6907_v47 = vld [vmem:[#allocation9 + $0x6ac] ss:$12 sps:$4 sm:$0xff]   ;;  %v6946_v18 = vld [vmem:[#allocation9 + $0x8f0] ss:$12 sps:$4 sm:$0xff]  }
 0x264   :  { %5097 = vmatmul.mubr.bf16.gmra.mrb[60].mxu1 %v7408_v19  ;;  %4772 = vmatprep.subr.bf16.mxu0 %v6860_v29  ;;  %v6942_v16 = vld [vmem:[#allocation9 + $0x818] ss:$12 sps:$4 sm:$0xff]   ;;  %v6908_v13 = vld [vmem:[#allocation9 + $0x6c0] ss:$12 sps:$4 sm:$0xff]   ;;  %v6915_v29 = vld [vmem:[#allocation9 + $0x6dc] ss:$12 sps:$4 sm:$0xff]  }
 0x265   :  { %5972 = vmatpush3.bf16.msra.mxu1 %v6861_v44  ;;  %5137 = vmatprep.mubr.bf16.mxu1 %v7387_v63  ;;  %v6910_v20 = vld [vmem:[#allocation9 + $0x6c4] ss:$12 sps:$4 sm:$0xff]  }
 0x266   :  { %5973 = vmatprep.subr.bf16.mxu1 %v6862_v30  ;;  %v6913_v44 = vld [vmem:[#allocation9 + $0x6d8] ss:$12 sps:$4 sm:$0xff]   ;;  %v6920_v30 = vld [vmem:[#allocation9 + $0x6f4] ss:$12 sps:$4 sm:$0xff]  }
 0x267   :  { %4773 = vmatpush1.bf16.msra.mxu0 %v6858_v31  ;;  %v6918_v31 = vld [vmem:[#allocation9 + $0x6f0] ss:$12 sps:$4 sm:$0xff]  }
 0x268   :  { %4774 = vmatprep.subr.bf16.mxu0 %v6865_v32  ;;  %v6925_v32 = vld [vmem:[#allocation9 + $0x70c] ss:$12 sps:$4 sm:$0xff]  }
 0x269   :  { %5974 = vmatpush3.bf16.msra.mxu1 %v6866_v33  ;;  %v6923_v33 = vld [vmem:[#allocation9 + $0x708] ss:$12 sps:$4 sm:$0xff]  }
 0x26a   :  { %5975 = vmatprep.subr.bf16.mxu1 %v6867_v34  ;;  %v6930_v34 = vld [vmem:[#allocation9 + $0x724] ss:$12 sps:$4 sm:$0xff]  }
 0x26b   :  { %4775 = vmatpush1.bf16.msra.mxu0 %v6863_v35  ;;  %v6928_v35 = vld [vmem:[#allocation9 + $0x720] ss:$12 sps:$4 sm:$0xff]  }
 0x26c   :  { %4776 = vmatprep.subr.bf16.mxu0 %v6870_v36  ;;  %v6935_v36 = vld [vmem:[#allocation9 + $0x73c] ss:$12 sps:$4 sm:$0xff]  }
 0x26d   :  { %5976 = vmatpush3.bf16.msra.mxu1 %v6871_v49  ;;  %v6933_v49 = vld [vmem:[#allocation9 + $0x738] ss:$12 sps:$4 sm:$0xff]  }
 0x26e   :  { %5977 = vmatprep.subr.bf16.mxu1 %v6872_v3  ;;  %v462_v3 = vrot.slane %v7373_v26, %v7358_v43 }
 0x26f   :  { %4777 = vmatpush1.bf16.msra.mxu0 %v6868_v37  ;;  %v6940_v37 = vld [vmem:[#allocation9 + $0x754] ss:$12 sps:$4 sm:$0xff]  }
 0x270   :  { %4778 = vmatprep.subr.bf16.mxu0 %v6875_v38  ;;  %v466_v38 = vrot.slane %v7373_v26, %v433_v9 }
 0x271   :  { %5978 = vmatpush3.bf16.msra.mxu1 %v6876_v40 }
 0x272   :  { %5979 = vmatprep.subr.bf16.mxu1 %v6877_v41  ;;  %v6938_v41 = vld [vmem:[#allocation9 + $0x750] ss:$12 sps:$4 sm:$0xff]  }
 0x273   :  { %4779 = vmatpush1.bf16.msra.mxu0 %v6873_v62 }
 0x274   :  { %4780 = vmatprep.subr.bf16.mxu0 %v6880_v27 }
 0x275   :  { %5980 = vmatpush3.bf16.msra.mxu1 %v6881_v45  ;;  %v6945_v45 = vld [vmem:[#allocation9 + $0x76c] ss:$12 sps:$4 sm:$0xff]  }
 0x276   :  { %5981 = vmatprep.subr.bf16.mxu1 %v6882_v46 }
 0x277   :  { %4781 = vmatpush1.bf16.msra.mxu0 %v6878_v50 }
 0x278   :  { %4803 = vmatprep.subr.bf16.mxu0 %v6885_v39 }
 0x279   :  { %5982 = vmatpush3.bf16.msra.mxu1 %v6886_v42 }
 0x27a   :  { %4783 = vmatmul.mubr.bf16.vlgmr.msra.gmra.mrb[16].mxu0 %v7405_v60  ;;  %5995 = vmatprep.subr.bf16.mxu1 %v6911_v51  ;;  %v6922_v60 = vld [vmem:[#allocation9 + $0x7b8] ss:$12 sps:$4 sm:$0xff]  }
 0x27b   :  { %4792 = vmatprep.mubr.bf16.mxu0 %v2666_v25  ;;  %4804 = vmatpush1.bf16.msra.mxu0 %v6883_v22  ;;  %v6947_v25 = vld [vmem:[#allocation9 + $0x830] ss:$12 sps:$4 sm:$0xff]  }
 0x27c   :  { %5138 = vmatmul.mubr.bf16.vlgmr.msra.gmra.mrb[64].mxu1 %v7385_v61  ;;  %4805 = vmatprep.subr.bf16.mxu0 %v6889_v54 }
 0x27d   :  { %5145 = vmatprep.mubr.bf16.mxu1 %v7391_v28  ;;  %5996 = vmatpush3.bf16.msra.mxu1 %v6912_v56  ;;  %v6943_v56 = vld [vmem:[#allocation9 + $0x768] ss:$12 sps:$4 sm:$0xff]  }
 0x27e   :  { %5997 = vmatprep.subr.bf16.mxu1 %v6916_v17 }
 0x27f   :  { %4806 = vmatpush1.bf16.msra.mxu0 %v6887_v57 }
 0x280   :  { %4807 = vmatprep.subr.bf16.mxu0 %v6892_v23 }
 0x281   :  { %5998 = vmatpush3.bf16.msra.mxu1 %v6917_v53  ;;  %v6948_v53 = vld [vmem:[#allocation9 + $0x780] ss:$12 sps:$4 sm:$0xff]  }
 0x282   :  { %4793 = vmatmul.mubr.bf16.gmra.mrb[20].mxu0 %v7408_v19  ;;  %5999 = vmatprep.subr.bf16.mxu1 %v6921_v0  ;;  %v6905_v19 = vld [vmem:[#allocation9 + $0x6a8] ss:$12 sps:$4 sm:$0xff]  }
 0x283   :  { %4808 = vmatpush1.bf16.msra.mxu0 %v6890_v1  ;;  %4835 = vmatprep.mubr.bf16.mxu0 %v7387_v63  ;;  %v6904_v63 = vld [vmem:[#allocation9 + $0x694] ss:$12 sps:$4 sm:$0xff]  }
 0x284   :  { %5146 = vmatmul.mubr.bf16.gmra.mrb[68].mxu1 %v7389_v21  ;;  %4809 = vmatprep.subr.bf16.mxu0 %v6895_v2  ;;  %v6953_v2 = vld [vmem:[#allocation9 + $0x79c] ss:$12 sps:$4 sm:$0xff]  }
 0x285   :  { %6000 = vmatpush3.bf16.msra.mxu1 %v6922_v60 }
 0x286   :  { %6001 = vmatprep.subr.bf16.mxu1 %v6926_v14 }
 0x287   :  { %4810 = vmatpush1.bf16.msra.mxu0 %v6893_v4 }
 0x288   :  { %4811 = vmatprep.subr.bf16.mxu0 %v6898_v15 }
 0x289   :  { %6002 = vmatpush3.bf16.msra.mxu1 %v6927_v5 }
 0x28a   :  { %6003 = vmatprep.subr.bf16.mxu1 %v6931_v6 }
 0x28b   :  { %4812 = vmatpush1.bf16.msra.mxu0 %v6896_v7 }
 0x28c   :  { %4813 = vmatprep.subr.bf16.mxu0 %v6901_v8  ;;  %v6951_v8 = vld [vmem:[#allocation9 + $0x798] ss:$12 sps:$4 sm:$0xff]  }
 0x28d   :  { %6004 = vmatpush3.bf16.msra.mxu1 %v6932_v10 }
 0x28e   :  { %6005 = vmatprep.subr.bf16.mxu1 %v6936_v58  ;;  %v6956_v58 = vld [vmem:[#allocation9 + $0x7b4] ss:$12 sps:$4 sm:$0xff]  }
 0x28f   :  { %4814 = vmatpush1.bf16.msra.mxu0 %v6899_v24 }
 0x290   :  { %4815 = vmatprep.subr.bf16.mxu0 %v6904_v63 }
 0x291   :  { %6006 = vmatpush3.bf16.msra.mxu1 %v6937_v11 }
 0x292   :  { %6007 = vmatprep.subr.bf16.mxu1 %v6941_v12  ;;  %v6954_v12 = vld [vmem:[#allocation9 + $0x7b0] ss:$12 sps:$4 sm:$0xff]  }
 0x293   :  { %4816 = vmatpush1.bf16.msra.mxu0 %v6902_v59  ;;  %v6962_v59 = vld [vmem:[#allocation9 + $0x7e4] ss:$12 sps:$4 sm:$0xff]  }
 0x294   :  { %4817 = vmatprep.subr.bf16.mxu0 %v6907_v47  ;;  %v6960_v47 = vld [vmem:[#allocation9 + $0x7e0] ss:$12 sps:$4 sm:$0xff]  }
 0x295   :  { %6008 = vmatpush3.bf16.msra.mxu1 %v6942_v16  ;;  %v6965_v16 = vld [vmem:[#allocation9 + $0x7fc] ss:$12 sps:$4 sm:$0xff]  }
 0x296   :  { %6009 = vmatprep.subr.bf16.mxu1 %v6946_v18  ;;  %v6963_v18 = vld [vmem:[#allocation9 + $0x7f8] ss:$12 sps:$4 sm:$0xff]  }
 0x297   :  { %4818 = vmatpush1.bf16.msra.mxu0 %v6905_v19  ;;  %v6968_v19 = vld [vmem:[#allocation9 + $0x814] ss:$12 sps:$4 sm:$0xff]  }
 0x298   :  { %4819 = vmatprep.subr.bf16.mxu0 %v6910_v20 }
 0x299   :  { %6010 = vmatpush3.bf16.msra.mxu1 %v6947_v25  ;;  %v6966_v25 = vld [vmem:[#allocation9 + $0x810] ss:$12 sps:$4 sm:$0xff]  }
 0x29b   :  { %4820 = vmatpush1.bf16.msra.mxu0 %v6908_v13 }
 0x29c   :  { %4821 = vmatprep.subr.bf16.mxu0 %v6915_v29 }
 0x29f   :  { %4822 = vmatpush1.bf16.msra.mxu0 %v6913_v44 }
 0x2a0   :  { %4823 = vmatprep.subr.bf16.mxu0 %v6920_v30 }
 0x2a3   :  { %4824 = vmatpush1.bf16.msra.mxu0 %v6918_v31 }
 0x2a4   :  { %4825 = vmatprep.subr.bf16.mxu0 %v6925_v32  ;;  %v6969_v32 = vld [vmem:[#allocation9 + $0x828] ss:$12 sps:$4 sm:$0xff]  }
 0x2a7   :  { %4826 = vmatpush1.bf16.msra.mxu0 %v6923_v33  ;;  %v6974_v33 = vld [vmem:[#allocation9 + $0x844] ss:$12 sps:$4 sm:$0xff]  }
 0x2a8   :  { %4827 = vmatprep.subr.bf16.mxu0 %v6930_v34 }
 0x2ab   :  { %4828 = vmatpush1.bf16.msra.mxu0 %v6928_v35  ;;  %v6972_v35 = vld [vmem:[#allocation9 + $0x840] ss:$12 sps:$4 sm:$0xff]  }
 0x2ac   :  { %4829 = vmatprep.subr.bf16.mxu0 %v6935_v36 }
 0x2af   :  { %4830 = vmatpush1.bf16.msra.mxu0 %v6933_v49  ;;  %v2568_v40 = vpop.f32.mrb[24].mxu1  ;;  %v6977_v49 = vld [vmem:[#allocation9 + $0x85c] ss:$12 sps:$4 sm:$0xff]  }
 0x2b0   :  { %v6063_v62 = vadd.f32 %v2568_v40, %v462_v3  ;;  %v2570_v27 = vpop.f32.mrb[25].mxu1  ;;  %4831 = vmatprep.subr.bf16.mxu0 %v6940_v37 }
 0x2b1   :  { %v6064_v46 = vadd.f32 %v2570_v27, %v466_v38  ;;  %v2572_v50 = vpop.f32.mrb[26].mxu1  ;;  %v6978_v27 = vld [vmem:[#allocation9 + $0x870] ss:$12 sps:$4 sm:$0xff]  }
 0x2b2   :  { %v2597_v39 = vmax.f32 %v6063_v62, 0.0  ;;  %v6065_v42 = vadd.f32 %v2572_v50, %v462_v3  ;;  %v2574_v51 = vpop.f32.mrb[27].mxu1  ;;  %v6980_v62 = vld [vmem:[#allocation9 + $0x874] ss:$12 sps:$4 sm:$0xff]   ;;  %v6986_v50 = vld [vmem:[#allocation9 + $0x8a4] ss:$12 sps:$4 sm:$0xff]  }
 0x2b3   :  { %v2598_v22 = vmax.f32 %v6064_v46, 0.0  ;;  %v6066_v54 = vadd.f32 %v2574_v51, %v466_v38  ;;  %4832 = vmatpush1.bf16.msra.mxu0 %v6938_v41  ;;  %v6975_v41 = vld [vmem:[#allocation9 + $0x858] ss:$12 sps:$4 sm:$0xff]   ;;  %v6981_v46 = vld [vmem:[#allocation9 + $0x888] ss:$12 sps:$4 sm:$0xff]  }
 0x2b4   :  { %v2609_v17 = vmax.f32 %v6065_v42, 0.0  ;;  %4833 = vmatprep.subr.bf16.mxu0 %v6945_v45  ;;  %v6983_v45 = vld [vmem:[#allocation9 + $0x88c] ss:$12 sps:$4 sm:$0xff]   ;;  %v6989_v42 = vld [vmem:[#allocation9 + $0x8bc] ss:$12 sps:$4 sm:$0xff]  }
 0x2b5   :  { %v2610_v9 = vmax.f32 %v6066_v54, 0.0  ;;  %v6987_v51 = vld [vmem:[#allocation9 + $0x8b8] ss:$12 sps:$4 sm:$0xff]  }
 0x2b6   :  { %v7423_v26 = vpack.c.bf16 %v2609_v17, %v2597_v39  ;;  %v6984_v39 = vld [vmem:[#allocation9 + $0x8a0] ss:$12 sps:$4 sm:$0xff]  }
 0x2b7   :  { %v2658_v57 = vpack.c.bf16 %v2610_v9, %v2598_v22  ;;  %4834 = vmatpush1.bf16.msra.mxu0 %v6943_v56  ;;  %v2578_v23 = vpop.f32.mrb[28].mxu1  ;;  %v6992_v22 = vld [vmem:[#allocation9 + $0x8d4] ss:$12 sps:$4 sm:$0xff]   ;;  %v6990_v56 = vld [vmem:[#allocation9 + $0x8d0] ss:$12 sps:$4 sm:$0xff]  }
 0x2b8   :  { %v6067_v0 = vadd.f32 %v2578_v23, %v462_v3  ;;  %v2580_v1 = vpop.f32.mrb[29].mxu1  ;;  %4856 = vmatprep.subr.bf16.mxu0 %v6950_v48  ;;  %v6995_v48 = vld [vmem:[#allocation9 + $0x8ec] ss:$12 sps:$4 sm:$0xff]  }
 0x2b9   :  { %v6068_v60 = vadd.f32 %v2580_v1, %v466_v38  ;;  %v2582_v14 = vpop.f32.mrb[30].mxu1  ;;  %5186 = vmatprep.mubr.bf16.mxu1 %v2658_v57  ;;  %v6993_v1 = vld [vmem:[#allocation9 + $0x8e8] ss:$12 sps:$4 sm:$0xff]  }
 0x2ba   :  { %v2621_v4 = vmax.f32 %v6067_v0, 0.0  ;;  %v6069_v15 = vadd.f32 %v2582_v14, %v462_v3  ;;  %4836 = vmatmul.mubr.bf16.vlgmr.msra.gmra.mrb[16].mxu0 %v7385_v61  ;;  %v2584_v5 = vpop.f32.mrb[31].mxu1  ;;  %5187 = vmatmul.mubr.bf16.vlgmr.msra.gmra.mrb[72].mxu1 %v7423_v26  ;;  %v6959_v61 = vld [vmem:[#allocation9 + $0x7cc] ss:$12 sps:$4 sm:$0xff]  }
 0x2bb   :  { %v2622_v6 = vmax.f32 %v6068_v60, 0.0  ;;  %v6070_v7 = vadd.f32 %v2584_v5, %v466_v38  ;;  %4845 = vmatprep.mubr.bf16.mxu0 %v7391_v28  ;;  %4857 = vmatpush1.bf16.msra.mxu0 %v6948_v53  ;;  %v6957_v28 = vld [vmem:[#allocation9 + $0x7c8] ss:$12 sps:$4 sm:$0xff]  }
 0x2bc   :  { %v2633_v10 = vmax.f32 %v6069_v15, 0.0  ;;  %4858 = vmatprep.subr.bf16.mxu0 %v6953_v2 }
 0x2bd   :  { %v2634_v24 = vmax.f32 %v6070_v7, 0.0 }
 0x2be   :  { %v7428_v63 = vpack.c.bf16 %v2633_v10, %v2621_v4 }
 0x2bf   :  { %v7430_v11 = vpack.c.bf16 %v2634_v24, %v2622_v6  ;;  %4859 = vmatpush1.bf16.msra.mxu0 %v6951_v8 }
 0x2c0   :  { %4860 = vmatprep.subr.bf16.mxu0 %v6956_v58 }
 0x2c1   :  { %5194 = vmatprep.mubr.bf16.mxu1 %v7430_v11 }
 0x2c2   :  { %4846 = vmatmul.mubr.bf16.gmra.mrb[20].mxu0 %v7389_v21  ;;  %5195 = vmatmul.mubr.bf16.gmra.mrb[76].mxu1 %v7428_v63  ;;  %v6971_v21 = vld [vmem:[#allocation9 + $0x82c] ss:$12 sps:$4 sm:$0xff]  }
 0x2c3   :  { %4861 = vmatpush1.bf16.msra.mxu0 %v6954_v12  ;;  %4888 = vmatprep.mubr.bf16.mxu0 %v2658_v57 }
 0x2c4   :  { %4862 = vmatprep.subr.bf16.mxu0 %v6959_v61 }
 0x2c7   :  { %4863 = vmatpush1.bf16.msra.mxu0 %v6957_v28 }
 0x2c8   :  { %4864 = vmatprep.subr.bf16.mxu0 %v6962_v59 }
 0x2cb   :  { %4865 = vmatpush1.bf16.msra.mxu0 %v6960_v47 }
 0x2cc   :  { %4866 = vmatprep.subr.bf16.mxu0 %v6965_v16 }
 0x2cf   :  { %4867 = vmatpush1.bf16.msra.mxu0 %v6963_v18  ;;  %v5871_v20 = vpop.f32.mrb[32].mxu1 }
 0x2d0   :  { %v5872_v13 = vpop.f32.mrb[33].mxu1  ;;  %4868 = vmatprep.subr.bf16.mxu0 %v6968_v19 }
 0x2d1   :  { %v5873_v29 = vadd.f32 %v5872_v13, %v5871_v20  ;;  %v5874_v44 = vpop.f32.mrb[34].mxu1 }
 0x2d2   :  { %v5875_v30 = vpop.f32.mrb[35].mxu1 }
 0x2d3   :  { %4869 = vmatpush1.bf16.msra.mxu0 %v6966_v25  ;;  %v5876_v31 = vadd.f32 %v5875_v30, %v5874_v44 }
 0x2d4   :  { %4870 = vmatprep.subr.bf16.mxu0 %v6971_v21 }
 0x2d7   :  { %4871 = vmatpush1.bf16.msra.mxu0 %v6969_v32  ;;  %v5877_v34 = vpop.f32.mrb[36].mxu1 }
 0x2d8   :  { %v5878_v36 = vpop.f32.mrb[37].mxu1  ;;  %4872 = vmatprep.subr.bf16.mxu0 %v6974_v33 }
 0x2d9   :  { %v5879_v3 = vadd.f32 %v5878_v36, %v5877_v34  ;;  %v5880_v37 = vpop.f32.mrb[38].mxu1 }
 0x2da   :  { %v5881_v38 = vpop.f32.mrb[39].mxu1 }
 0x2db   :  { %4873 = vmatpush1.bf16.msra.mxu0 %v6972_v35  ;;  %v5882_v40 = vadd.f32 %v5881_v38, %v5880_v37 }
 0x2dc   :  { %4874 = vmatprep.subr.bf16.mxu0 %v6977_v49 }
 0x2df   :  { %4875 = vmatpush1.bf16.msra.mxu0 %v6975_v41 }
 0x2e0   :  { %4876 = vmatprep.subr.bf16.mxu0 %v6980_v62 }
 0x2e3   :  { %4877 = vmatpush1.bf16.msra.mxu0 %v6978_v27 }
 0x2e4   :  { %4878 = vmatprep.subr.bf16.mxu0 %v6983_v45 }
 0x2e7   :  { %4879 = vmatpush1.bf16.msra.mxu0 %v6981_v46 }
 0x2e8   :  { %4880 = vmatprep.subr.bf16.mxu0 %v6986_v50 }
 0x2eb   :  { %4881 = vmatpush1.bf16.msra.mxu0 %v6984_v39 }
 0x2ec   :  { %4882 = vmatprep.subr.bf16.mxu0 %v6989_v42 }
 0x2ef   :  { %4883 = vmatpush1.bf16.msra.mxu0 %v6987_v51  ;;  %v5899_v54 = vpop.f32.mrb[40].mxu1 }
 0x2f0   :  { %v5900_v17 = vpop.f32.mrb[41].mxu1  ;;  %4884 = vmatprep.subr.bf16.mxu0 %v6992_v22 }
 0x2f1   :  { %v5901_v9 = vadd.f32 %v5900_v17, %v5899_v54  ;;  %v5902_v57 = vpop.f32.mrb[42].mxu1 }
 0x2f2   :  { %v5903_v23 = vpop.f32.mrb[43].mxu1 }
 0x2f3   :  { %v4993_v53 = vadd.f32 %v5901_v9, %v5873_v29  ;;  %4885 = vmatpush1.bf16.msra.mxu0 %v6990_v56  ;;  %v5904_v0 = vadd.f32 %v5903_v23, %v5902_v57  ;;  %v90_v23 = vld [vmem:[#allocation11] sm:$0x7] }
 0x2f4   :  { %4886 = vmatprep.subr.bf16.mxu0 %v6995_v48 }
 0x2f5   :  { %v4996_v2 = vadd.f32 %v5904_v0, %v5876_v31 }
 0x2f7   :  { %4887 = vmatpush1.bf16.msra.mxu0 %v6993_v1  ;;  %v5905_v60 = vpop.f32.mrb[44].mxu1  ;;  %v103_v1 = vrot.slane %v90_v23, %v7358_v43 }
 0x2f8   :  { %v5906_v14 = vpop.f32.mrb[45].mxu1 }
 0x2f9   :  { %v5907_v4 = vadd.f32 %v5906_v14, %v5905_v60  ;;  %v5908_v15 = vpop.f32.mrb[46].mxu1 }
 0x2fa   :  { %4889 = vmatmul.mubr.bf16.vlgmr.msra.gmra.mrb[16].mxu0 %v7423_v26  ;;  %v5909_v5 = vpop.f32.mrb[47].mxu1 }
 0x2fb   :  { %v5001_v6 = vadd.f32 %v5907_v4, %v5879_v3  ;;  %4898 = vmatprep.mubr.bf16.mxu0 %v7430_v11  ;;  %v5910_v7 = vadd.f32 %v5909_v5, %v5908_v15 }
 0x2fd   :  { %v5004_v8 = vadd.f32 %v5910_v7, %v5882_v40 }
 0x302   :  { %4899 = vmatmul.mubr.bf16.gmra.mrb[20].mxu0 %v7428_v63 }
 0x30f   :  { %v5927_v10 = vpop.f32.mrb[48].mxu1 }
 0x310   :  { %v5928_v58 = vpop.f32.mrb[49].mxu1 }
 0x311   :  { %v5929_v24 = vadd.f32 %v5928_v58, %v5927_v10  ;;  %v5930_v12 = vpop.f32.mrb[50].mxu1 }
 0x312   :  { %v5931_v61 = vpop.f32.mrb[51].mxu1 }
 0x313   :  { %v5042_v28 = vadd.f32 %v5929_v24, %v4993_v53  ;;  %v5932_v59 = vadd.f32 %v5931_v61, %v5930_v12 }
 0x315   :  { %v5045_v47 = vadd.f32 %v5932_v59, %v4996_v2 }
 0x317   :  { %v5933_v16 = vpop.f32.mrb[52].mxu1 }
 0x318   :  { %v5934_v18 = vpop.f32.mrb[53].mxu1 }
 0x319   :  { %v5935_v19 = vadd.f32 %v5934_v18, %v5933_v16  ;;  %v5936_v26 = vpop.f32.mrb[54].mxu1  ;;  %v95_v16 = vrot.slane %v90_v23, %v7314_v52  ;;  %v99_v18 = vrot.slane %v90_v23, %v7319_v55 }
 0x31a   :  { %v5937_v20 = vpop.f32.mrb[55].mxu1 }
 0x31b   :  { %v5050_v25 = vadd.f32 %v5935_v19, %v5001_v6  ;;  %v5938_v13 = vadd.f32 %v5937_v20, %v5936_v26 }
 0x31d   :  { %v5053_v11 = vadd.f32 %v5938_v13, %v5004_v8 }
 0x32f   :  { %v5955_v21 = vpop.f32.mrb[56].mxu1 }
 0x330   :  { %v5956_v29 = vpop.f32.mrb[57].mxu1 }
 0x331   :  { %v5957_v44 = vadd.f32 %v5956_v29, %v5955_v21  ;;  %v5958_v63 = vpop.f32.mrb[58].mxu1 }
 0x332   :  { %v5959_v30 = vpop.f32.mrb[59].mxu1 }
 0x333   :  { %v5091_v31 = vadd.f32 %v5957_v44, %v5042_v28  ;;  %v5960_v32 = vadd.f32 %v5959_v30, %v5958_v63 }
 0x335   :  { %v5094_v33 = vadd.f32 %v5960_v32, %v5045_v47 }
 0x337   :  { %v5961_v34 = vpop.f32.mrb[60].mxu1 }
 0x338   :  { %v5962_v35 = vpop.f32.mrb[61].mxu1 }
 0x339   :  { %v5963_v36 = vadd.f32 %v5962_v35, %v5961_v34  ;;  %v5964_v49 = vpop.f32.mrb[62].mxu1 }
 0x33a   :  { %v5965_v3 = vpop.f32.mrb[63].mxu1 }
 0x33b   :  { %v5099_v37 = vadd.f32 %v5963_v36, %v5050_v25  ;;  %v5966_v38 = vadd.f32 %v5965_v3, %v5964_v49 }
 0x33d   :  { %v5102_v40 = vadd.f32 %v5966_v38, %v5053_v11 }
 0x34f   :  { %v5983_v41 = vpop.f32.mrb[64].mxu1 }
 0x350   :  { %v5984_v62 = vpop.f32.mrb[65].mxu1 }
 0x351   :  { %v5985_v27 = vadd.f32 %v5984_v62, %v5983_v41  ;;  %v5986_v45 = vpop.f32.mrb[66].mxu1 }
 0x352   :  { %v5987_v46 = vpop.f32.mrb[67].mxu1 }
 0x353   :  { %v5140_v50 = vadd.f32 %v5985_v27, %v5091_v31  ;;  %v5988_v39 = vadd.f32 %v5987_v46, %v5986_v45 }
 0x355   :  { %v5143_v42 = vadd.f32 %v5988_v39, %v5094_v33 }
 0x357   :  { %v5989_v51 = vpop.f32.mrb[68].mxu1 }
 0x358   :  { %v5990_v22 = vpop.f32.mrb[69].mxu1 }
 0x359   :  { %v5991_v54 = vadd.f32 %v5990_v22, %v5989_v51  ;;  %v5992_v56 = vpop.f32.mrb[70].mxu1 }
 0x35a   :  { %v5993_v17 = vpop.f32.mrb[71].mxu1 }
 0x35b   :  { %v5148_v48 = vadd.f32 %v5991_v54, %v5099_v37  ;;  %v5994_v9 = vadd.f32 %v5993_v17, %v5992_v56 }
 0x35d   :  { %v5151_v57 = vadd.f32 %v5994_v9, %v5102_v40 }
 0x38d   :  { %v6011_v53 = vpop.f32.mrb[72].mxu1 }
 0x38e   :  { %v6012_v0 = vpop.f32.mrb[73].mxu1 }
 0x38f   :  { %v6013_v2 = vadd.f32 %v6012_v0, %v6011_v53  ;;  %v6014_v60 = vpop.f32.mrb[74].mxu1 }
 0x390   :  { %v6015_v14 = vpop.f32.mrb[75].mxu1 }
 0x391   :  { %v5189_v4 = vadd.f32 %v6013_v2, %v5140_v50  ;;  %v6016_v15 = vadd.f32 %v6015_v14, %v6014_v60 }
 0x393   :  { %v5205_v5 = vadd.f32 %v5189_v4, %v103_v1  ;;  %v5192_v6 = vadd.f32 %v6016_v15, %v5143_v42 }
 0x395   :  { %5244 = vst [vmem:[#allocation12 + $0x10] sm:$0xff] %v5205_v5  ;;  %v5208_v7 = vadd.f32 %v5192_v6, %v103_v1  ;;  %v6017_v8 = vpop.f32.mrb[76].mxu1 }
 0x396   :  { %v6018_v10 = vpop.f32.mrb[77].mxu1 }
 0x397   :  { %5247 = vst [vmem:[#allocation12 + $0x28] sm:$0xff] %v5208_v7  ;;  %v6019_v58 = vadd.f32 %v6018_v10, %v6017_v8  ;;  %v6020_v24 = vpop.f32.mrb[78].mxu1 }
 0x398   :  { %v6021_v12 = vpop.f32.mrb[79].mxu1 }
 0x399   :  { %v5197_v61 = vadd.f32 %v6019_v58, %v5148_v48  ;;  %v6022_v28 = vadd.f32 %v6021_v12, %v6020_v24 }
 0x39b   :  { %v5211_v59 = vadd.f32 %v5197_v61, %v103_v1  ;;  %v5200_v47 = vadd.f32 %v6022_v28, %v5151_v57 }
 0x39d   :  { %5250 = vst [vmem:[#allocation12 + $0x40] sm:$0xff] %v5211_v59  ;;  %v5214_v43 = vadd.f32 %v5200_v47, %v103_v1 }
 0x39f   :  { %5253 = vst [vmem:[#allocation12 + $0x58] sm:$0xff] %v5214_v43 }
 0x3cd   :  { %v4890_v19 = vpop.f32.mrb[16].mxu0 }
 0x3ce   :  { %v5203_v26 = vadd.f32 %v4890_v19, %v95_v16  ;;  %v4892_v20 = vpop.f32.mrb[17].mxu0 }
 0x3cf   :  { %v5204_v25 = vadd.f32 %v4892_v20, %v99_v18  ;;  %v4894_v13 = vpop.f32.mrb[18].mxu0 }
 0x3d0   :  { %5242 = vst [vmem:[#allocation12] sm:$0xff] %v5203_v26  ;;  %v5206_v11 = vadd.f32 %v4894_v13, %v95_v16  ;;  %v4896_v21 = vpop.f32.mrb[19].mxu0 }
 0x3d1   :  { %5243 = vst [vmem:[#allocation12 + $0x8] sm:$0xff] %v5204_v25  ;;  %v5207_v29 = vadd.f32 %v4896_v21, %v99_v18 }
 0x3d2   :  { %5245 = vst [vmem:[#allocation12 + $0x18] sm:$0xff] %v5206_v11 }
 0x3d3   :  { %5246 = vst [vmem:[#allocation12 + $0x20] sm:$0xff] %v5207_v29 }
 0x3d5   :  { %v4900_v44 = vpop.f32.mrb[20].mxu0 }
 0x3d6   :  { %v5209_v63 = vadd.f32 %v4900_v44, %v95_v16  ;;  %v4902_v30 = vpop.f32.mrb[21].mxu0 }
 0x3d7   :  { %v5210_v52 = vadd.f32 %v4902_v30, %v99_v18  ;;  %v4904_v31 = vpop.f32.mrb[22].mxu0 }
 0x3d8   :  { %5248 = vst [vmem:[#allocation12 + $0x30] sm:$0xff] %v5209_v63  ;;  %v5212_v55 = vadd.f32 %v4904_v31, %v95_v16  ;;  %v4906_v32 = vpop.f32.mrb[23].mxu0 }
 0x3d9   :  { %5249 = vst [vmem:[#allocation12 + $0x38] sm:$0xff] %v5210_v52  ;;  %v5213_v33 = vadd.f32 %v4906_v32, %v99_v18 }
 0x3da   :  { %5251 = vst [vmem:[#allocation12 + $0x48] sm:$0xff] %v5212_v55 }
 0x3db   :  { %5252 = vst [vmem:[#allocation12 + $0x50] sm:$0xff] %v5213_v33 }
 0x3dc   :  { %7124 = shalt.err (!%p7121_p2)
}
 0x3dd   :  { %s7125_s6 = scalar_lea.hbm %s7458_s5, 1536 }
 0x3de   :  { %p7126_p3 = scmp.ne.s32.totalorder %s7458_s5, %s7125_s6  ;;  %p7129_p4 = scmp.lt.u32.totalorder %s7125_s6, %s7458_s5 }
 0x3e0   :  { %p7131_p5 = pnand %p7129_p4, %p7126_p3 }
 0x3e2   :  { %7134 = shalt.err (!%p7131_p5)
}
 0x3e3   :  { %s7154_s12 = smov 384   ;;  %s7155_s13 = smov 24  }
 0x3e4   :  { %5265 = dma.vmem_to_hbm [thread:$0]  %s5260_s28, 1536, %s7458_s5, [#allocation5], %s7154_s12, %s7154_s12, %s7155_s13  }
 0x3e5   :  { %7141 = dma.done.wait [#allocation5], 1536  }
 0x3e6   :  { %7142 = vsyncadd [#allocation5], 4294965760 }
 0x3e7   :  { %5269 = vsyncpa [#allocation4], 1 }
 0x3e8   :  { %5270 = vsyncpa [#allocation7], 1 }
 0x3e9   :  { %5271 = vsyncpa [#allocation10], 1 }
 0x3ea   :  { %5272 = vsyncpa [#allocation5], 1 }

</bundles_post_ra>
